<compile_context>
chip_gen: v6e
topology: v6e:2x2x1
jax: 0.10.0
libtpu: 0.0.40
codegen_flags: <defaults>
</compile_context>

<pallas_src>
import functools

import numpy as np
import jax
import jax.numpy as jnp
from jax import lax
from jax.experimental import pallas as pl
from jax.experimental.pallas import tpu as pltpu


def _round_up(x, m):
    return (x + m - 1) // m * m


def _cdiv(a, b):
    return (a + b - 1) // b


_VMEM_LIMIT = 64 * 1024 * 1024
_K_SINGLE_CAP = 2048


def _cparams(sem):
    return pltpu.CompilerParams(dimension_semantics=sem,
                                vmem_limit_bytes=_VMEM_LIMIT)


# ---------------------------------------------------------------------------
# Adaptive tile selection
# ---------------------------------------------------------------------------
def _pick_tk(K):
    """Return (tk, Kp, nk). Single K tile (tk=K) whenever it fits."""
    if K <= _K_SINGLE_CAP:
        Kp = _round_up(K, 8)
        return Kp, Kp, 1
    best_tk, best_pad = None, None
    for tk in (1024, 896, 768, 640, 512):          # minimize K padding
        pad = _round_up(K, tk) - K
        if best_pad is None or pad < best_pad:
            best_tk, best_pad = tk, pad
    Kp = _round_up(K, best_tk)
    return best_tk, Kp, Kp // best_tk


def _pick_tn(Ndim):
    """Return (tn, Np). No padding for N <= 512 (full-dim block)."""
    if Ndim <= 512:
        return Ndim, Ndim
    best_tn, best_pad = None, None
    for tn in (512, 384, 256, 128):
        pad = _round_up(Ndim, tn) - Ndim
        if best_pad is None or pad < best_pad:
            best_tn, best_pad = tn, pad
    return best_tn, _round_up(Ndim, best_tn)


def _pick_tm(M, cap):
    if M <= cap:
        return M
    # Prefer an exact divisor of M (multiple of 8) -> zero M padding.
    for d in range(cap, 7, -1):
        if d % 8 == 0 and M % d == 0:
            if d >= max(64, cap // 4):
                return d
            break
    nb = _cdiv(M, cap)
    return _round_up(_cdiv(M, nb), 16)


# ---------------------------------------------------------------------------
# Pallas matmul kernels (bias + activation fused, f32 accumulation)
# ---------------------------------------------------------------------------
def _apply_act(r, act):
    if act == "relu":
        return jnp.maximum(r, 0.0)
    if act == "sigmoid":
        return jax.nn.sigmoid(r)
    return r


def _mm_single_kernel(a_ref, b_ref, bias_ref, o_ref, *, act):
    # K fits in one tile: no reduction axis, no accumulator, no pl.when phases.
    r = jnp.dot(a_ref[...], b_ref[...], preferred_element_type=jnp.float32)
    o_ref[...] = _apply_act(r + bias_ref[...], act).astype(o_ref.dtype)


def _mm_multi_kernel(a_ref, b_ref, bias_ref, o_ref, acc_ref, *, act):
    @pl.when(pl.program_id(2) == 0)
    def _():
        acc_ref[...] = jnp.zeros_like(acc_ref)

    acc_ref[...] += jnp.dot(a_ref[...], b_ref[...],
                            preferred_element_type=jnp.float32)

    @pl.when(pl.program_id(2) == pl.num_programs(2) - 1)
    def _():
        o_ref[...] = _apply_act(acc_ref[...] + bias_ref[...],
                                act).astype(o_ref.dtype)


def matmul_bias_act(a, b, bias, *, act="none", out_dtype=jnp.float32):
    """(M,K) @ (K,N) + bias[N], fused activation, f32 accumulation."""
    M, K = a.shape
    K2, Ndim = b.shape
    assert K == K2
    tk, Kp, nk = _pick_tk(K)
    tn, Np = _pick_tn(Ndim)
    if nk == 1 and K <= 512 and Ndim <= 128:
        cap = 1024                       # skinny, memory-bound
    elif nk == 1:
        cap = 512
    else:
        cap = 256
    tm = _pick_tm(M, cap)
    Mp = _round_up(M, tm)

    if (Mp, Kp) != (M, K):
        a = jnp.pad(a, ((0, Mp - M), (0, Kp - K)))
    if (Kp, Np) != (K, Ndim):
        b = jnp.pad(b, ((0, Kp - K), (0, Np - Ndim)))
    bias = bias.astype(jnp.float32)
    if Np != Ndim:
        bias_p = jnp.zeros((1, Np), jnp.float32).at[0, :Ndim].set(bias)
    else:
        bias_p = bias.reshape(1, Ndim)

    if nk == 1:
        out = pl.pallas_call(
            functools.partial(_mm_single_kernel, act=act),
            out_shape=jax.ShapeDtypeStruct((Mp, Np), out_dtype),
            grid_spec=pltpu.PrefetchScalarGridSpec(
                num_scalar_prefetch=0,
                grid=(Mp // tm, Np // tn),
                in_specs=[
                    pl.BlockSpec((tm, Kp), lambda i, j: (i, 0)),
                    pl.BlockSpec((Kp, tn), lambda i, j: (0, j)),
                    pl.BlockSpec((1, tn), lambda i, j: (0, j)),
                ],
                out_specs=pl.BlockSpec((tm, tn), lambda i, j: (i, j)),
            ),
            compiler_params=_cparams(("parallel", "parallel")),
        )(a, b, bias_p)
    else:
        out = pl.pallas_call(
            functools.partial(_mm_multi_kernel, act=act),
            out_shape=jax.ShapeDtypeStruct((Mp, Np), out_dtype),
            grid_spec=pltpu.PrefetchScalarGridSpec(
                num_scalar_prefetch=0,
                grid=(Mp // tm, Np // tn, nk),
                in_specs=[
                    pl.BlockSpec((tm, tk), lambda i, j, k: (i, k)),
                    pl.BlockSpec((tk, tn), lambda i, j, k: (k, j)),
                    pl.BlockSpec((1, tn), lambda i, j, k: (0, j)),
                ],
                out_specs=pl.BlockSpec((tm, tn), lambda i, j, k: (i, j)),
                scratch_shapes=[pltpu.VMEM((tm, tn), jnp.float32)],
            ),
            compiler_params=_cparams(("parallel", "parallel", "arbitrary")),
        )(a, b, bias_p)

    if (Mp, Np) != (M, Ndim):
        out = out[:M, :Ndim]
    return out


def _bmm_kernel(a_ref, b_ref, o_ref, *, act):
    r = jnp.dot(a_ref[...], b_ref[0], preferred_element_type=jnp.float32)
    o_ref[0] = _apply_act(r, act).astype(o_ref.dtype)


def bmm_shared_a(a, b, *, act="none", out_dtype=jnp.float32):
    """out[n] = act(a @ b[n]).  a: (M,K) shared A; b: (Nb,K,L); single-K tile."""
    M, K = a.shape
    Nb, K2, L = b.shape
    assert K == K2
    Kp = _round_up(K, 8)
    assert Kp <= _K_SINGLE_CAP
    tn, Lp = _pick_tn(L)
    tm = _pick_tm(M, 512)
    Mp = _round_up(M, tm)
    if (Mp, Kp) != (M, K):
        a = jnp.pad(a, ((0, Mp - M), (0, Kp - K)))
    if (Kp, Lp) != (K, L):
        b = jnp.pad(b, ((0, 0), (0, Kp - K), (0, Lp - L)))
    out = pl.pallas_call(
        functools.partial(_bmm_kernel, act=act),
        out_shape=jax.ShapeDtypeStruct((Nb, Mp, Lp), out_dtype),
        grid_spec=pltpu.PrefetchScalarGridSpec(
            num_scalar_prefetch=0,
            grid=(Nb, Mp // tm, Lp // tn),
            in_specs=[
                pl.BlockSpec((tm, Kp), lambda n, i, j: (i, 0)),
                pl.BlockSpec((1, Kp, tn), lambda n, i, j: (n, 0, j)),
            ],
            out_specs=pl.BlockSpec((1, tm, tn), lambda n, i, j: (n, i, j)),
        ),
        compiler_params=_cparams(("parallel", "parallel", "parallel")),
    )(a, b)
    if (Mp, Lp) != (M, L):
        out = out[:, :M, :L]
    return out


# ---------------------------------------------------------------------------
# Ops built on the matmul kernels (NHWC, bf16 activations end-to-end)
# ---------------------------------------------------------------------------
def conv2d_nhwc(x, wm, bias, *, k, pad, act):
    """Stride-1 conv.  x: (N,H,W,Cin) bf16; wm: pre-packed (k*k*Cin, Cout) bf16."""
    N, H, W, Cin = x.shape
    x = x.astype(jnp.bfloat16)
    if k == 1:
        a = x.reshape(N * H * W, Cin)
    else:
        # TODO(synk): replace im2col with a direct-conv kernel-tap reduction axis.
        xp = jnp.pad(x, ((0, 0), (pad, pad), (pad, pad), (0, 0)))
        cols = [xp[:, i:i + H, j:j + W, :] for i in range(k) for j in range(k)]
        a = jnp.concatenate(cols, axis=-1).reshape(N * H * W, k * k * Cin)
    y = matmul_bias_act(a, wm, bias, act=act, out_dtype=jnp.bfloat16)
    return y.reshape(N, H, W, wm.shape[1])


def _interp_matrix(out_size, in_size):
    """1-D bilinear (align_corners=True) interpolation matrix, on host (f32)."""
    w = np.zeros((out_size, in_size), np.float32)
    if in_size == 1:
        w[:, 0] = 1.0
        return w
    for i in range(out_size):
        src = i * (in_size - 1) / (out_size - 1) if out_size > 1 else 0.0
        lo = min(int(np.floor(src)), in_size - 2)
        frac = src - lo
        w[i, lo] += 1.0 - frac
        w[i, lo + 1] += frac
    return w


def upsample_bilinear_relu(x, wh, wwt):
    """relu(F.upsample(x, (Ho,Wo), 'bilinear', align_corners=True)), separable.

    x: (N,Hi,Wi,C) bf16;  wh: (Ho,Hi) f32;  wwt: (Wi,Wo) f32  ->  (N,Ho,Wo,C) bf16
    """
    N, Hi, Wi, C = x.shape
    Ho, Wo = wh.shape[0], wwt.shape[1]
    # 1) width interpolation on the small map (channels folded into the rows).
    a = x.transpose(0, 1, 3, 2).reshape(N * Hi * C, Wi)
    s = matmul_bias_act(a, wwt, jnp.zeros((Wo,), jnp.float32),
                        act="none", out_dtype=jnp.float32)
    s = s.reshape(N, Hi, C, Wo).transpose(0, 1, 3, 2).reshape(N, Hi, Wo * C)
    # 2) height interpolation straight to the full-res NHWC map, ReLU fused.
    u = bmm_shared_a(wh, s, act="relu", out_dtype=jnp.bfloat16)
    return u.reshape(N, Ho, Wo, C)


# ---------------------------------------------------------------------------
# Fused global_conv + all eleven 1x1 predicts + sigmoids (one pallas_call)
# ---------------------------------------------------------------------------
def _fused_predict_kernel(u0_ref, u1_ref, u2_ref, u3_ref, u4_ref,
                          wg_ref, bg_ref, wpu_ref, wpg_ref, bp_ref, o_ref):
    us = (u0_ref, u1_ref, u2_ref, u3_ref, u4_ref)
    g = jnp.dot(us[0][...], wg_ref[0], preferred_element_type=jnp.float32)
    p = jnp.dot(us[0][...], wpu_ref[0], preferred_element_type=jnp.float32)
    for i in range(1, 5):
        ui = us[i][...]
        g = g + jnp.dot(ui, wg_ref[i], preferred_element_type=jnp.float32)
        p = p + jnp.dot(ui, wpu_ref[i], preferred_element_type=jnp.float32)
    g = jnp.maximum(g + bg_ref[...], 0.0)                # global_conv + ReLU
    p = p + jnp.dot(g, wpg_ref[...], preferred_element_type=jnp.float32)
    o_ref[...] = jax.nn.sigmoid(p + bp_ref[...]).astype(o_ref.dtype)


def fused_global_predict(ups, wg5, bg, wpu, wpg, bp):
    """ups: five (N,Ho,Wo,32) bf16 maps -> (N,Ho,Wo,7) f32 sigmoid predictions."""
    N, Ho, Wo, C = ups[0].shape
    M = N * Ho * Wo
    tm = _pick_tm(M, 2048)
    Mp = _round_up(M, tm)
    flat = [u.reshape(M, C) for u in ups]
    if Mp != M:
        flat = [jnp.pad(u, ((0, Mp - M), (0, 0))) for u in flat]
    u_spec = pl.BlockSpec((tm, C), lambda i: (i, 0))
    out = pl.pallas_call(
        _fused_predict_kernel,
        out_shape=jax.ShapeDtypeStruct((Mp, 7), jnp.float32),
        grid_spec=pltpu.PrefetchScalarGridSpec(
            num_scalar_prefetch=0,
            grid=(Mp // tm,),
            in_specs=[u_spec] * 5 + [
                pl.BlockSpec((5, C, C), lambda i: (0, 0, 0)),
                pl.BlockSpec((1, C), lambda i: (0, 0)),
                pl.BlockSpec((5, C, 7), lambda i: (0, 0, 0)),
                pl.BlockSpec((C, 7), lambda i: (0, 0)),
                pl.BlockSpec((1, 7), lambda i: (0, 0)),
            ],
            out_specs=pl.BlockSpec((tm, 7), lambda i: (i, 0)),
        ),
        compiler_params=_cparams(("parallel",)),
    )(*flat, wg5, bg, wpu, wpg, bp)
    if Mp != M:
        out = out[:M]
    return out.reshape(N, Ho, Wo, 7)


# ---------------------------------------------------------------------------
# DSC parameters
# ---------------------------------------------------------------------------
CONV_META = {  # name -> (kernel, padding, activation)
    "layer4_conv1": (7, 3, "relu"), "layer4_conv2": (7, 3, "relu"),
    "layer4_conv3": (1, 0, "none"),
    "layer3_conv1": (5, 2, "relu"), "layer3_conv2": (5, 2, "relu"),
    "layer3_conv3": (1, 0, "none"),
    "layer2_conv1": (5, 2, "relu"), "layer2_conv2": (5, 2, "relu"),
    "layer2_conv3": (1, 0, "none"),
    "layer1_conv1": (3, 1, "relu"), "layer1_conv2": (3, 1, "relu"),
    "layer1_conv3": (1, 0, "none"),
    "layer0_conv1": (3, 1, "relu"), "layer0_conv2": (3, 1, "relu"),
    "layer0_conv3": (1, 0, "none"),
    "global_conv": (1, 0, "relu"),
}

PREDICT_CHANNELS = {
    "layer4_predict": 32,
    "layer3_predict_ori": 32, "layer3_predict": 2,
    "layer2_predict_ori": 32, "layer2_predict": 3,
    "layer1_predict_ori": 32, "layer1_predict": 4,
    "layer0_predict_ori": 32, "layer0_predict": 5,
    "global_predict": 32, "fusion_predict": 6,
}

# Real DSC widths (ResNeXt101 backbone).  The demo below uses scaled-down
# widths so the self-contained example stays small/fast; structure identical.
FULL_WIDTHS = {"backbone": (64, 256, 512, 1024, 2048),
               "mid": (128, 128, 256, 512, 1024)}
DEMO_WIDTHS = {"backbone": (16, 32, 64, 128, 256),
               "mid": (16, 16, 32, 64, 128)}


def _conv_channels(widths):
    c0, c1, c2, c3, c4 = widths["backbone"]
    m0, m1, m2, m3, m4 = widths["mid"]
    return {
        "layer4_conv1": (m4, c4), "layer4_conv2": (m4, m4), "layer4_conv3": (32, m4),
        "layer3_conv1": (m3, c3), "layer3_conv2": (m3, m3), "layer3_conv3": (32, m3),
        "layer2_conv1": (m2, c2), "layer2_conv2": (m2, m2), "layer2_conv3": (32, m2),
        "layer1_conv1": (m1, c1), "layer1_conv2": (m1, m1), "layer1_conv3": (32, m1),
        "layer0_conv1": (m0, c0), "layer0_conv2": (m0, m0), "layer0_conv3": (32, m0),
        "global_conv": (32, 160),
    }


def init_params(key, widths):
    chans = _conv_channels(widths)
    names = list(chans) + list(PREDICT_CHANNELS)
    keys = dict(zip(names, jax.random.split(key, len(names))))
    params = {"convs": {}, "predicts": {}}
    for name, (cout, cin) in chans.items():
        k, _, _ = CONV_META[name]
        kw_, kb_ = jax.random.split(keys[name])
        fan_in = cin * k * k
        w = jax.random.normal(kw_, (cout, cin, k, k), jnp.float32) * (2.0 / fan_in) ** 0.5
        b = jax.random.normal(kb_, (cout,), jnp.float32) * 0.01
        # pre-pack once: OIHW -> HWIO -> (k*k*Cin, Cout), stored in bf16
        wm = w.transpose(2, 3, 1, 0).reshape(k * k * cin, cout).astype(jnp.bfloat16)
        params["convs"][name] = {"w": wm, "b": b}
    for name, cin in PREDICT_CHANNELS.items():
        kw_, kb_ = jax.random.split(keys[name])
        w = jax.random.normal(kw_, (cin,), jnp.float32) * (2.0 / cin) ** 0.5
        b = jax.random.normal(kb_, ()) * 0.01
        params["predicts"][name] = (w, b)
    return params


def _fuse_predict_weights(preds):
    """Compose the (purely affine) 1x1-conv predict cascade into one (192,7) map.

    Input channel blocks (192 = 6*32): [l0_up, l1_up, l2_up, l3_up, l4_up, gconv]
    Output columns:                     [p4, p3, p2, p1, p0, pg, pf]
    """
    W1 = jnp.zeros((192, 6), jnp.float32)     # X -> u = [p0o,p1o,p2o,p3o,p4,pg]
    c1 = jnp.zeros((6,), jnp.float32)
    first = ["layer0_predict_ori", "layer1_predict_ori", "layer2_predict_ori",
             "layer3_predict_ori", "layer4_predict", "global_predict"]
    for i, name in enumerate(first):
        w, b = preds[name]
        W1 = W1.at[32 * i:32 * (i + 1), i].set(w)
        c1 = c1.at[i].set(b)

    M2 = jnp.zeros((6, 7), jnp.float32)       # u -> outputs
    c2 = jnp.zeros((7,), jnp.float32)
    M2 = M2.at[4, 0].set(1.0)                 # p4
    M2 = M2.at[5, 5].set(1.0)                 # pg
    w3, b3 = preds["layer3_predict"]          # cat(p3o, p4)
    M2 = M2.at[3, 1].set(w3[0]).at[4, 1].set(w3[1]); c2 = c2.at[1].set(b3)
    w2, b2 = preds["layer2_predict"]          # cat(p2o, p3o, p4)
    M2 = M2.at[2, 2].set(w2[0]).at[3, 2].set(w2[1]).at[4, 2].set(w2[2])
    c2 = c2.at[2].set(b2)
    w1, b1 = preds["layer1_predict"]          # cat(p1o, p2o, p3o, p4)
    M2 = (M2.at[1, 3].set(w1[0]).at[2, 3].set(w1[1])
            .at[3, 3].set(w1[2]).at[4, 3].set(w1[3]))
    c2 = c2.at[3].set(b1)
    w0, b0 = preds["layer0_predict"]          # cat(p0o, p1o, p2o, p3o, p4)
    for r in range(5):
        M2 = M2.at[r, 4].set(w0[r])
    c2 = c2.at[4].set(b0)
    wf, bf = preds["fusion_predict"]          # cat(p0, p1, p2, p3, p4, pg)
    col_f = (wf[0] * M2[:, 4] + wf[1] * M2[:, 3] + wf[2] * M2[:, 2]
             + wf[3] * M2[:, 1] + wf[4] * M2[:, 0] + wf[5] * M2[:, 5])
    cst_f = (wf[0] * c2[4] + wf[1] * c2[3] + wf[2] * c2[2]
             + wf[3] * c2[1] + wf[4] * c2[0] + wf[5] * c2[5] + bf)
    M2 = M2.at[:, 6].set(col_f)
    c2 = c2.at[6].set(cst_f)

    Wbig = W1 @ M2
    bbig = c1 @ M2 + c2
    return Wbig, bbig


def dsc_forward(params, feats, out_hw):
    """DSC.forward (eval mode).  feats = NHWC (layer0..layer4) feature maps."""
    H, W = out_hw
    convs = params["convs"]

    ups = []
    for lname, feat in zip(("layer0", "layer1", "layer2", "layer3", "layer4"),
                           feats):
        x = feat.astype(jnp.bfloat16)
        for suffix in ("_conv1", "_conv2", "_conv3"):
            name = lname + suffix
            k, pad, act = CONV_META[name]
            x = conv2d_nhwc(x, convs[name]["w"], convs[name]["b"],
                            k=k, pad=pad, act=act)
        Hin, Win = feat.shape[1], feat.shape[2]
        wh = jnp.asarray(_interp_matrix(H, Hin))          # (H, Hin) f32
        wwt = jnp.asarray(_interp_matrix(W, Win).T)       # (Win, W) f32
        ups.append(upsample_bilinear_relu(x, wh, wwt))    # relu(upsample(conv3))

    # global_conv + all eleven 1x1 predicts + sigmoids -> one fused Pallas call.
    Wbig, bbig = _fuse_predict_weights(params["predicts"])
    wg5 = convs["global_conv"]["w"].reshape(5, 32, 32)            # bf16
    bg = convs["global_conv"]["b"].reshape(1, 32).astype(jnp.float32)
    wpu = Wbig[:160].reshape(5, 32, 7)
    wpg = Wbig[160:192]
    bp = bbig.reshape(1, 7)
    preds = fused_global_predict(ups, wg5, bg, wpu, wpg, bp)      # (N,H,W,7)

    # NCHW only at the module boundary; order = (p4, p3, p2, p1, p0, pg, pf)
    return tuple(preds[..., i:i + 1].transpose(0, 3, 1, 2) for i in range(7))


# ---------------------------------------------------------------------------
if __name__ == "__main__":
    key = jax.random.PRNGKey(0)
    kp, k0, k1, k2, k3, k4, kx, ku = jax.random.split(key, 8)

    # Small demo shapes (scaled-down channel widths; structure identical).
    # Switch widths=FULL_WIDTHS and larger H,W for the real DSC configuration.
    N, H, W = 2, 64, 64
    widths = DEMO_WIDTHS
    c0, c1, c2, c3, c4 = widths["backbone"]

    feats_nchw = [
        jax.random.normal(k0, (N, c0, H // 4, W // 4), jnp.float32),
        jax.random.normal(k1, (N, c1, H // 4, W // 4), jnp.float32),
        jax.random.normal(k2, (N, c2, H // 8, W // 8), jnp.float32),
        jax.random.normal(k3, (N, c3, H // 16, W // 16), jnp.float32),
        jax.random.normal(k4, (N, c4, H // 32, W // 32), jnp.float32),
    ]
    feats = tuple(f.transpose(0, 2, 3, 1) for f in feats_nchw)   # NHWC inside

    params = init_params(kp, widths)

    # --- check 1: conv-as-matmul Pallas path vs lax.conv (3x3, pad 1, ReLU) ---
    name = "layer1_conv1"
    k_, pad_, act_ = CONV_META[name]
    wm = params["convs"][name]["w"]
    bias = params["convs"][name]["b"]
    cin, cout = feats[1].shape[-1], bias.shape[0]
    w_hwio = wm.astype(jnp.float32).reshape(k_, k_, cin, cout)
    x_q = feats[1].astype(jnp.bfloat16).astype(jnp.float32)
    ref = lax.conv_general_dilated(
        x_q, w_hwio, (1, 1), [(pad_, pad_)] * 2,
        dimension_numbers=("NHWC", "HWIO", "NHWC"),
        precision=lax.Precision.HIGHEST) + bias[None, None, None, :]
    ref = jnp.maximum(ref, 0.0)
    got = conv2d_nhwc(feats[1], wm, bias, k=k_, pad=pad_,
                      act=act_).astype(jnp.float32)
    err = float(jnp.max(jnp.abs(got - ref)))
    assert err <= 2e-2 * (1.0 + float(jnp.max(jnp.abs(ref)))), f"conv mismatch {err}"

    # --- check 2: separable Pallas upsample vs dense einsum reference --------
    xu = jax.random.normal(ku, (N, 8, 8, 32), jnp.float32).astype(jnp.bfloat16)
    whm = jnp.asarray(_interp_matrix(H, 8))
    wwm = jnp.asarray(_interp_matrix(W, 8))
    got_u = upsample_bilinear_relu(xu, whm, wwm.T).astype(jnp.float32)
    tmp = jnp.einsum("ah,nhwc->nawc", whm, xu.astype(jnp.float32))
    ref_u = jnp.maximum(jnp.einsum("bw,nawc->nabc", wwm, tmp), 0.0)
    erru = float(jnp.max(jnp.abs(got_u - ref_u)))
    assert erru <= 2e-2 * (1.0 + float(jnp.max(jnp.abs(ref_u)))), f"upsample {erru}"

    # --- check 3: fused (192->7) predict composition vs explicit cascade -----
    Wbig, bbig = _fuse_predict_weights(params["predicts"])
    Xt = jax.random.normal(kx, (64, 192), jnp.float32)
    blk = [Xt[:, 32 * i:32 * (i + 1)] for i in range(6)]
    pp = params["predicts"]

    def pred1(nm, v):
        w, b = pp[nm]
        return v @ w + b

    def predc(nm, vs):
        w, b = pp[nm]
        return sum(w[i] * vs[i] for i in range(len(vs))) + b

    p0o = pred1("layer0_predict_ori", blk[0])
    p1o = pred1("layer1_predict_ori", blk[1])
    p2o = pred1("layer2_predict_ori", blk[2])
    p3o = pred1("layer3_predict_ori", blk[3])
    p4v = pred1("layer4_predict", blk[4])
    pgv = pred1("global_predict", blk[5])
    p3v = predc("layer3_predict", [p3o, p4v])
    p2v = predc("layer2_predict", [p2o, p3o, p4v])
    p1v = predc("layer1_predict", [p1o, p2o, p3o, p4v])
    p0v = predc("layer0_predict", [p0o, p1o, p2o, p3o, p4v])
    pfv = predc("fusion_predict", [p0v, p1v, p2v, p3v, p4v, pgv])
    ref_c = jnp.stack([p4v, p3v, p2v, p1v, p0v, pgv, pfv], axis=-1)
    got_c = Xt @ Wbig + bbig
    errc = float(jnp.max(jnp.abs(got_c - ref_c)))
    assert errc <= 1e-3, f"predict composition mismatch {errc}"

    # --- full forward ---------------------------------------------------------
    fwd = jax.jit(dsc_forward, static_argnames=("out_hw",))
    outs = fwd(params, feats, out_hw=(H, W))
    outs = jax.block_until_ready(outs)

    for o in outs:
        assert o.shape == (N, 1, H, W)
        assert bool(jnp.all(jnp.isfinite(o)))
        assert bool(jnp.all((o >= 0.0) & (o <= 1.0)))   # sigmoid outputs
    print("KERNEL_OK")
</pallas_src>

<mosaic_0001>
module attributes {stable_mosaic.version = 11 : i64} {
  func.func @_mm_single_kernel(%arg0: i32, %arg1: i32, %arg2: memref<512x288xbf16, #tpu.memory_space<vmem>>, %arg3: memref<288x16xbf16, #tpu.memory_space<vmem>>, %arg4: memref<1x16xf32, #tpu.memory_space<vmem>>, %arg5: memref<512x16xbf16, #tpu.memory_space<vmem>>) attributes {dimension_semantics = [#tpu.dimension_semantics<parallel>, #tpu.dimension_semantics<parallel>], iteration_bounds = array<i64: 1, 1>, scalar_prefetch = 0 : i64, scratch_operands = 0 : i64, tpu.core_type = #tpu.core_type<tc>, window_params = [{transform_indices = @transform_0, window_bounds = array<i64: 512, 288>}, {transform_indices = @transform_1, window_bounds = array<i64: 288, 16>}, {transform_indices = @transform_2, window_bounds = array<i64: 1, 16>}, {transform_indices = @transform_3, window_bounds = array<i64: 512, 16>}]} {
    %c0 = arith.constant 0 : index
    %c0_0 = arith.constant 0 : index
    %0 = vector.load %arg2[%c0, %c0_0] : memref<512x288xbf16, #tpu.memory_space<vmem>>, vector<512x288xbf16>
    %c0_1 = arith.constant 0 : index
    %c0_2 = arith.constant 0 : index
    %1 = vector.load %arg3[%c0_1, %c0_2] : memref<288x16xbf16, #tpu.memory_space<vmem>>, vector<288x16xbf16>
    %cst = arith.constant dense<0.000000e+00> : vector<512x16xf32>
    %2 = tpu.matmul %0, %1, %cst {dimension_numbers = #tpu.dot_dimension_numbers<[1], [0], [0], [1], [0, 0, 1, 1], [], []>} : vector<512x288xbf16>, vector<288x16xbf16>, vector<512x16xf32> -> vector<512x16xf32>
    %c0_3 = arith.constant 0 : index
    %c0_4 = arith.constant 0 : index
    %3 = vector.load %arg4[%c0_3, %c0_4] : memref<1x16xf32, #tpu.memory_space<vmem>>, vector<1x16xf32>
    %4 = vector.broadcast %3 : vector<1x16xf32> to vector<512x16xf32>
    %5 = arith.addf %2, %4 : vector<512x16xf32>
    %cst_5 = arith.constant 0.000000e+00 : f32
    %6 = vector.broadcast %cst_5 : f32 to vector<512x16xf32>
    %7 = arith.maximumf %5, %6 : vector<512x16xf32>
    %8 = arith.truncf %7 : vector<512x16xf32> to vector<512x16xbf16>
    %c0_6 = arith.constant 0 : index
    %c0_7 = arith.constant 0 : index
    %9 = vector.load %arg5[%c0_6, %c0_7] : memref<512x16xbf16, #tpu.memory_space<vmem>>, vector<512x16xbf16>
    tpu.vector_store %arg5[%c0_6, %c0_7], %8 {strides = array<i32>} : memref<512x16xbf16, #tpu.memory_space<vmem>>, vector<512x16xbf16>,
    return
  }
  func.func @transform_0(%arg0: i32, %arg1: i32) -> (i32, i32) {
    %c0_i32 = arith.constant 0 : i32
    %c0_i32_0 = arith.constant 0 : i32
    return %arg0, %c0_i32 : i32, i32
  }
  func.func @transform_1(%arg0: i32, %arg1: i32) -> (i32, i32) {
    %c0_i32 = arith.constant 0 : i32
    %c0_i32_0 = arith.constant 0 : i32
    return %c0_i32, %arg1 : i32, i32
  }
  func.func @transform_2(%arg0: i32, %arg1: i32) -> (i32, i32) {
    %c0_i32 = arith.constant 0 : i32
    %c0_i32_0 = arith.constant 0 : i32
    return %c0_i32, %arg1 : i32, i32
  }
  func.func @transform_3(%arg0: i32, %arg1: i32) -> (i32, i32) {
    %c0_i32 = arith.constant 0 : i32
    return %arg0, %arg1 : i32, i32
  }
}

</mosaic_0001>

<bundles_post_ra>
// kernel: tpu_custom_call.1
= control target key start
LH: loop header
LB: loop body
LE: loop exit
PB: predicated region body
PF: predicated region fallthrough
CT: control target
= control target key end

     0   :  { %v2394_v0 = vmov 0   ;;  %vm774_vm0 = vcmask 261120   ;;  %vm1769_vm1 = vcmask 125952   ;;  %s3269_s1 = inlined_call_operand.vmem [shape: bf16[288,16], index: 1, kind: input, shape index: {}]   ;;  %s3270_s0 = inlined_call_operand.vmem [shape: bf16[512,288], index: 0, kind: input, shape index: {}]   ;;  %s3271_s2 = inlined_call_operand.vmem [shape: f32[1,16], index: 2, kind: input, shape index: {}]   ;;  %s3272_s3 = inlined_call_operand.vmem [shape: bf16[512,16], index: 3, kind: output, shape index: {}]  }
   0x1   :  { %871 = vmatprep.subr.bf16.mxu0 %v2394_v0  ;;  %2215 = vmatprep.subr.bf16.mxu1 %v2394_v0  ;;  %v2248_v1 = vld [vmem:[%s3269_s1 + $0x38] sm:$0xff]   ;;  %v2249_v2 = vld [vmem:[%s3269_s1 + $0x30] sm:$0xff]   ;;  %v2250_v3 = vld [vmem:[%s3269_s1 + $0x28] sm:$0xff]  }
   0x2   :  { %872 = vmatpush1.bf16.msra.mxu0 %v2248_v1  ;;  %2231 = vmatpush1.bf16.msra.mxu1 %v2248_v1  ;;  %v2251_v4 = vld [vmem:[%s3269_s1 + $0x20] sm:$0xff]   ;;  %v2252_v5 = vld [vmem:[%s3269_s1 + $0x18] sm:$0xff]   ;;  %v2253_v7 = vld [vmem:[%s3269_s1 + $0x10] sm:$0xff]  }
   0x3   :  { %873 = vmatprep.subr.bf16.mxu0 %v2394_v0  ;;  %2216 = vmatprep.subr.bf16.mxu1 %v2394_v0  ;;  %v2266_v6 = vld [vmem:[%s3270_s0 + $0x4] ss:$12 sps:$4 sm:$0xff]   ;;  %v2254_v9 = vld [vmem:[%s3269_s1 + $0x8] sm:$0xff]   ;;  %v2256_v11 = vld [vmem:[%s3269_s1 + $0x78] sm:$0xff]  }
   0x4   :  { %v2269_v8 = vld [vmem:[%s3270_s0 + $0x244] ss:$12 sps:$4 sm:$0xff]   ;;  %903 = vmatprep.mubr.bf16.mxu0 %v2266_v6  ;;  %v2258_v13 = vld [vmem:[%s3269_s1 + $0x68] sm:$0xff]   ;;  %v2260_v15 = vld [vmem:[%s3269_s1 + $0x58] sm:$0xff]  }
   0x5   :  { %1095 = vmatprep.mubr.bf16.mxu1 %v2269_v8  ;;  %v2255_v10 = vld [vmem:[%s3269_s1] sm:$0xff]   ;;  %v2257_v12 = vld [vmem:[%s3269_s1 + $0x70] sm:$0xff]   ;;  %v2262_v17 = vld [vmem:[%s3269_s1 + $0x48] sm:$0xff]  }
   0x6   :  { %874 = vmatpush1.bf16.msra.mxu0 %v2249_v2  ;;  %2232 = vmatpush1.bf16.msra.mxu1 %v2249_v2  ;;  %v2259_v14 = vld [vmem:[%s3269_s1 + $0x60] sm:$0xff]   ;;  %v2261_v16 = vld [vmem:[%s3269_s1 + $0x50] sm:$0xff]   ;;  %v2270_v19 = vld [vmem:[%s3269_s1 + $0x88] sm:$0xff]  }
   0x7   :  { %875 = vmatprep.subr.bf16.mxu0 %v2394_v0  ;;  %2217 = vmatprep.subr.bf16.mxu1 %v2394_v0  ;;  %v2263_v18 = vld [vmem:[%s3269_s1 + $0x40] sm:$0xff]   ;;  %v2271_v22 = vld [vmem:[%s3270_s0 + $0x1c] ss:$12 sps:$4 sm:$0xff]   ;;  %v2283_v31 = vld [vmem:[%s3270_s0 + $0x4c] ss:$12 sps:$4 sm:$0xff]  }
   0x8   :  { %v2264_v20 = vld [vmem:[%s3270_s0] ss:$12 sps:$4 sm:$0xff]   ;;  %v2273_v23 = vld [vmem:[%s3270_s0 + $0x25c] ss:$12 sps:$4 sm:$0xff]   ;;  %v2275_v25 = vld [vmem:[%s3270_s0 + $0x18] ss:$12 sps:$4 sm:$0xff]  }
   0x9   :  { %v2267_v21 = vld [vmem:[%s3270_s0 + $0x240] ss:$12 sps:$4 sm:$0xff]   ;;  %v2276_v26 = vld [vmem:[%s3270_s0 + $0x258] ss:$12 sps:$4 sm:$0xff]   ;;  %v2281_v29 = vld [vmem:[%s3270_s0 + $0x30] ss:$12 sps:$4 sm:$0xff]  }
   0xa   :  { %876 = vmatpush1.bf16.msra.mxu0 %v2250_v3  ;;  %2233 = vmatpush1.bf16.msra.mxu1 %v2250_v3  ;;  %v2295_v24 = vld [vmem:[%s3269_s1 + $0x80] sm:$0xff]   ;;  %v2282_v30 = vld [vmem:[%s3270_s0 + $0x270] ss:$12 sps:$4 sm:$0xff]   ;;  %v2285_v32 = vld [vmem:[%s3270_s0 + $0x28c] ss:$12 sps:$4 sm:$0xff]  }
   0xb   :  { %877 = vmatprep.subr.bf16.mxu0 %v2394_v0  ;;  %2218 = vmatprep.subr.bf16.mxu1 %v2394_v0  ;;  %v2277_v27 = vld [vmem:[%s3270_s0 + $0x34] ss:$12 sps:$4 sm:$0xff]   ;;  %v2289_v35 = vld [vmem:[%s3270_s0 + $0x64] ss:$12 sps:$4 sm:$0xff]   ;;  %v2296_v39 = vld [vmem:[%s3270_s0 + $0x7c] ss:$12 sps:$4 sm:$0xff]  }
   0xc   :  { %v2279_v28 = vld [vmem:[%s3270_s0 + $0x274] ss:$12 sps:$4 sm:$0xff]   ;;  %v2291_v36 = vld [vmem:[%s3270_s0 + $0x2a4] ss:$12 sps:$4 sm:$0xff]   ;;  %v2298_v40 = vld [vmem:[%s3270_s0 + $0x2bc] ss:$12 sps:$4 sm:$0xff]  }
   0xd   :  { %v2287_v33 = vld [vmem:[%s3270_s0 + $0x48] ss:$12 sps:$4 sm:$0xff]   ;;  %v2293_v37 = vld [vmem:[%s3270_s0 + $0x60] ss:$12 sps:$4 sm:$0xff]   ;;  %v2300_v41 = vld [vmem:[%s3270_s0 + $0x78] ss:$12 sps:$4 sm:$0xff]  }
   0xe   :  { %878 = vmatpush1.bf16.msra.mxu0 %v2251_v4  ;;  %2234 = vmatpush1.bf16.msra.mxu1 %v2251_v4  ;;  %v2288_v34 = vld [vmem:[%s3270_s0 + $0x288] ss:$12 sps:$4 sm:$0xff]   ;;  %v2294_v38 = vld [vmem:[%s3270_s0 + $0x2a0] ss:$12 sps:$4 sm:$0xff]   ;;  %v2301_v42 = vld [vmem:[%s3270_s0 + $0x2b8] ss:$12 sps:$4 sm:$0xff]  }
   0xf   :  { %879 = vmatprep.subr.bf16.mxu0 %v2394_v0  ;;  %2219 = vmatprep.subr.bf16.mxu1 %v2394_v0  ;;  %v2302_v43 = vld [vmem:[%s3270_s0 + $0x94] ss:$12 sps:$4 sm:$0xff]   ;;  %v2306_v45 = vld [vmem:[%s3270_s0 + $0x90] ss:$12 sps:$4 sm:$0xff]   ;;  %v2308_v47 = vld [vmem:[%s3270_s0 + $0xac] ss:$12 sps:$4 sm:$0xff]  }
  0x10   :  { %v2304_v44 = vld [vmem:[%s3270_s0 + $0x2d4] ss:$12 sps:$4 sm:$0xff]   ;;  %v2307_v46 = vld [vmem:[%s3270_s0 + $0x2d0] ss:$12 sps:$4 sm:$0xff]   ;;  %v2310_v48 = vld [vmem:[%s3270_s0 + $0x2ec] ss:$12 sps:$4 sm:$0xff]  }
  0x11   :  { %v2312_v49 = vld [vmem:[%s3270_s0 + $0xa8] ss:$12 sps:$4 sm:$0xff]   ;;  %v2314_v51 = vld [vmem:[%s3270_s0 + $0xc4] ss:$12 sps:$4 sm:$0xff]   ;;  %v2317_v53 = vld [vmem:[%s3270_s0 + $0xc0] ss:$12 sps:$4 sm:$0xff]  }
  0x12   :  { %880 = vmatpush1.bf16.msra.mxu0 %v2252_v5  ;;  %2235 = vmatpush1.bf16.msra.mxu1 %v2252_v5  ;;  %v2313_v50 = vld [vmem:[%s3270_s0 + $0x2e8] ss:$12 sps:$4 sm:$0xff]   ;;  %v2318_v54 = vld [vmem:[%s3270_s0 + $0x20] ss:$12 sps:$4 sm:$0xff]   ;;  %v2321_v56 = vld [vmem:[%s3270_s0 + $0x38] ss:$12 sps:$4 sm:$0xff]  }
  0x13   :  { %881 = vmatprep.subr.bf16.mxu0 %v2394_v0  ;;  %2220 = vmatprep.subr.bf16.mxu1 %v2394_v0  ;;  %v2316_v52 = vld [vmem:[%s3270_s0 + $0x8] ss:$12 sps:$4 sm:$0xff]   ;;  %v2322_v57 = vld [vmem:[%s3270_s0 + $0xd8] ss:$12 sps:$4 sm:$0xff]   ;;  %v2323_v58 = vld [vmem:[%s3270_s0 + $0x50] ss:$12 sps:$4 sm:$0xff]  }
  0x14   :  { %v2319_v55 = vld [vmem:[%s3270_s0 + $0xdc] ss:$12 sps:$4 sm:$0xff]   ;;  %v2324_v59 = vld [vmem:[%s3270_s0 + $0xf4] ss:$12 sps:$4 sm:$0xff]   ;;  %v2329_v63 = vld [vmem:[%s3270_s0 + $0x10c] ss:$12 sps:$4 sm:$0xff]  }
  0x15   :  { %v2326_v60 = vld [vmem:[%s3270_s0 + $0x68] ss:$12 sps:$4 sm:$0xff]   ;;  %v2327_v61 = vld [vmem:[%s3270_s0 + $0xf0] ss:$12 sps:$4 sm:$0xff]   ;;  %v2328_v62 = vld [vmem:[%s3270_s0 + $0x80] ss:$12 sps:$4 sm:$0xff]  }
  0x16   :  { %882 = vmatpush1.bf16.msra.mxu0 %v2253_v7  ;;  %2236 = vmatpush1.bf16.msra.mxu1 %v2253_v7  ;;  %v2332_v1 = vld [vmem:[%s3270_s0 + $0x108] ss:$12 sps:$4 sm:$0xff]   ;;  %v2333_v2 = vld [vmem:[%s3270_s0 + $0xb0] ss:$12 sps:$4 sm:$0xff]   ;;  %v2337_v5 = vld [vmem:[%s3270_s0 + $0x120] ss:$12 sps:$4 sm:$0xff]  }
  0x17   :  { %883 = vmatprep.subr.bf16.mxu0 %v2394_v0  ;;  %2221 = vmatprep.subr.bf16.mxu1 %v2394_v0  ;;  %v2334_v3 = vld [vmem:[%s3270_s0 + $0x124] ss:$12 sps:$4 sm:$0xff]   ;;  %v2336_v4 = vld [vmem:[%s3270_s0 + $0xc8] ss:$12 sps:$4 sm:$0xff]   ;;  %v2338_v6 = vld [vmem:[%s3270_s0 + $0xe0] ss:$12 sps:$4 sm:$0xff]  }
  0x18   :  { %v2339_v7 = vld [vmem:[%s3270_s0 + $0x13c] ss:$12 sps:$4 sm:$0xff]   ;;  %v2341_v8 = vld [vmem:[%s3270_s0 + $0xf8] ss:$12 sps:$4 sm:$0xff]  }
  0x1a   :  { %884 = vmatpush1.bf16.msra.mxu0 %v2254_v9  ;;  %2237 = vmatpush1.bf16.msra.mxu1 %v2254_v9  ;;  %v2342_v9 = vld [vmem:[%s3270_s0 + $0x138] ss:$12 sps:$4 sm:$0xff]  }
  0x1b   :  { %885 = vmatprep.subr.bf16.mxu0 %v2394_v0  ;;  %2222 = vmatprep.subr.bf16.mxu1 %v2394_v0 }
  0x1e   :  { %886 = vmatpush1.bf16.msra.mxu0 %v2255_v10  ;;  %2238 = vmatpush1.bf16.msra.mxu1 %v2255_v10  ;;  %v2343_v10 = vld [vmem:[%s3270_s0 + $0x110] ss:$12 sps:$4 sm:$0xff]  }
  0x1f   :  { %887 = vmatprep.subr.bf16.mxu0 %v2394_v0  ;;  %2223 = vmatprep.subr.bf16.mxu1 %v2394_v0 }
  0x22   :  { %888 = vmatpush2.bf16.msra.mxu0 %v2256_v11  ;;  %2239 = vmatpush2.bf16.msra.mxu1 %v2256_v11  ;;  %v2344_v11 = vld [vmem:[%s3270_s0 + $0x154] ss:$12 sps:$4 sm:$0xff]  }
  0x23   :  { %889 = vmatprep.subr.bf16.mxu0 %v2394_v0  ;;  %2224 = vmatprep.subr.bf16.mxu1 %v2394_v0 }
  0x26   :  { %890 = vmatpush2.bf16.msra.mxu0 %v2257_v12  ;;  %2240 = vmatpush2.bf16.msra.mxu1 %v2257_v12  ;;  %v2346_v12 = vld [vmem:[%s3270_s0 + $0x128] ss:$12 sps:$4 sm:$0xff]  }
  0x27   :  { %891 = vmatprep.subr.bf16.mxu0 %v2394_v0  ;;  %2225 = vmatprep.subr.bf16.mxu1 %v2394_v0 }
  0x2a   :  { %892 = vmatpush2.bf16.msra.mxu0 %v2258_v13  ;;  %2241 = vmatpush2.bf16.msra.mxu1 %v2258_v13  ;;  %v2347_v13 = vld [vmem:[%s3270_s0 + $0x150] ss:$12 sps:$4 sm:$0xff]  }
  0x2b   :  { %893 = vmatprep.subr.bf16.mxu0 %v2394_v0  ;;  %2226 = vmatprep.subr.bf16.mxu1 %v2394_v0 }
  0x2e   :  { %894 = vmatpush2.bf16.msra.mxu0 %v2259_v14  ;;  %2242 = vmatpush2.bf16.msra.mxu1 %v2259_v14  ;;  %v2348_v14 = vld [vmem:[%s3270_s0 + $0x140] ss:$12 sps:$4 sm:$0xff]  }
  0x2f   :  { %895 = vmatprep.subr.bf16.mxu0 %v2394_v0  ;;  %2227 = vmatprep.subr.bf16.mxu1 %v2394_v0 }
  0x32   :  { %896 = vmatpush2.bf16.msra.mxu0 %v2260_v15  ;;  %2243 = vmatpush2.bf16.msra.mxu1 %v2260_v15  ;;  %v2349_v15 = vld [vmem:[%s3270_s0 + $0x16c] ss:$12 sps:$4 sm:$0xff]  }
  0x33   :  { %897 = vmatprep.subr.bf16.mxu0 %v2394_v0  ;;  %2228 = vmatprep.subr.bf16.mxu1 %v2394_v0 }
  0x36   :  { %898 = vmatpush2.bf16.msra.mxu0 %v2261_v16  ;;  %2244 = vmatpush2.bf16.msra.mxu1 %v2261_v16  ;;  %v2351_v16 = vld [vmem:[%s3270_s0 + $0x158] ss:$12 sps:$4 sm:$0xff]  }
  0x37   :  { %899 = vmatprep.subr.bf16.mxu0 %v2394_v0  ;;  %2229 = vmatprep.subr.bf16.mxu1 %v2394_v0 }
  0x3a   :  { %900 = vmatpush2.bf16.msra.mxu0 %v2262_v17  ;;  %2245 = vmatpush2.bf16.msra.mxu1 %v2262_v17  ;;  %v2352_v17 = vld [vmem:[%s3270_s0 + $0x168] ss:$12 sps:$4 sm:$0xff]  }
  0x3b   :  { %901 = vmatprep.subr.bf16.mxu0 %v2394_v0  ;;  %2230 = vmatprep.subr.bf16.mxu1 %v2394_v0  ;;  %v2331_v0 = vld [vmem:[%s3270_s0 + $0x98] ss:$12 sps:$4 sm:$0xff]  }
  0x3e   :  { %902 = vmatpush2.bf16.msra.mxu0 %v2263_v18  ;;  %2246 = vmatpush2.bf16.msra.mxu1 %v2263_v18  ;;  %v2353_v18 = vld [vmem:[%s3270_s0 + $0x170] ss:$12 sps:$4 sm:$0xff]  }
  0x3f   :  { %2147 = vmatprep.subr.bf16.mxu1 %v2270_v19 }
  0x41   :  { %904 = vmatmul.mubr.bf16.vlgmr.msra.gmra.mxu0 %v2264_v20  ;;  %1096 = vmatmul.mubr.bf16.vlgmr.msra.gmra.mxu1 %v2267_v21  ;;  %v2356_v20 = vld [vmem:[%s3270_s0 + $0x188] ss:$12 sps:$4 sm:$0xff]   ;;  %v2357_v21 = vld [vmem:[%s3270_s0 + $0x180] ss:$12 sps:$4 sm:$0xff]  }
  0x42   :  { %2148 = vmatpush3.bf16.msra.mxu1 %v2270_v19  ;;  %911 = vmatprep.mubr.bf16.mxu0 %v2271_v22  ;;  %v2354_v19 = vld [vmem:[%s3270_s0 + $0x184] ss:$12 sps:$4 sm:$0xff]   ;;  %v2358_v22 = vld [vmem:[%s3270_s0 + $0x1a0] ss:$12 sps:$4 sm:$0xff]  }
  0x43   :  { %1103 = vmatprep.mubr.bf16.mxu1 %v2273_v23  ;;  %2149 = vmatprep.subr.bf16.mxu1 %v2295_v24  ;;  %v2359_v23 = vld [vmem:[%s3270_s0 + $0x19c] ss:$12 sps:$4 sm:$0xff]  }
  0x46   :  { %2150 = vmatpush3.bf16.msra.mxu1 %v2295_v24  ;;  %v2361_v24 = vld [vmem:[%s3270_s0 + $0x1b8] ss:$12 sps:$4 sm:$0xff]  }
  0x49   :  { %912 = vmatmul.mubr.bf16.gmra.mxu0 %v2275_v25  ;;  %1104 = vmatmul.mubr.bf16.gmra.mxu1 %v2276_v26  ;;  %v2362_v25 = vld [vmem:[%s3270_s0 + $0x198] ss:$12 sps:$4 sm:$0xff]   ;;  %v2363_v26 = vld [vmem:[%s3270_s0 + $0x1d0] ss:$12 sps:$4 sm:$0xff]  }
  0x4a   :  { %919 = vmatprep.mubr.bf16.mxu0 %v2277_v27  ;;  %1111 = vmatprep.mubr.bf16.mxu1 %v2279_v28  ;;  %v2364_v27 = vld [vmem:[%s3270_s0 + $0x1b4] ss:$12 sps:$4 sm:$0xff]  }
  0x4b   :  { %v2366_v28 = vld [vmem:[%s3270_s0 + $0x1e8] ss:$12 sps:$4 sm:$0xff]  }
  0x51   :  { %920 = vmatmul.mubr.bf16.gmra.mxu0 %v2281_v29  ;;  %1112 = vmatmul.mubr.bf16.gmra.mxu1 %v2282_v30  ;;  %v2367_v29 = vld [vmem:[%s3270_s0 + $0x1b0] ss:$12 sps:$4 sm:$0xff]   ;;  %v2368_v30 = vld [vmem:[%s3270_s0 + $0x200] ss:$12 sps:$4 sm:$0xff]  }
  0x52   :  { %927 = vmatprep.mubr.bf16.mxu0 %v2283_v31  ;;  %1119 = vmatprep.mubr.bf16.mxu1 %v2285_v32  ;;  %v2369_v31 = vld [vmem:[%s3270_s0 + $0x1cc] ss:$12 sps:$4 sm:$0xff]  }
  0x53   :  { %v2371_v32 = vld [vmem:[%s3270_s0 + $0x218] ss:$12 sps:$4 sm:$0xff]  }
  0x59   :  { %928 = vmatmul.mubr.bf16.gmra.mxu0 %v2287_v33  ;;  %1120 = vmatmul.mubr.bf16.gmra.mxu1 %v2288_v34  ;;  %v2372_v33 = vld [vmem:[%s3270_s0 + $0x1c8] ss:$12 sps:$4 sm:$0xff]   ;;  %v2373_v34 = vld [vmem:[%s3270_s0 + $0x230] ss:$12 sps:$4 sm:$0xff]  }
  0x5a   :  { %935 = vmatprep.mubr.bf16.mxu0 %v2289_v35  ;;  %1127 = vmatprep.mubr.bf16.mxu1 %v2291_v36  ;;  %v2374_v35 = vld [vmem:[%s3270_s0 + $0x1e4] ss:$12 sps:$4 sm:$0xff]   ;;  %v2376_v36 = vld [vmem:[%s3270_s0 + $0x248] ss:$12 sps:$4 sm:$0xff]  }
  0x61   :  { %936 = vmatmul.mubr.bf16.gmra.mxu0 %v2293_v37  ;;  %1128 = vmatmul.mubr.bf16.gmra.mxu1 %v2294_v38  ;;  %v2377_v37 = vld [vmem:[%s3270_s0 + $0x1e0] ss:$12 sps:$4 sm:$0xff]  }
  0x62   :  { %943 = vmatprep.mubr.bf16.mxu0 %v2296_v39  ;;  %1135 = vmatprep.mubr.bf16.mxu1 %v2298_v40  ;;  %v2378_v38 = vld [vmem:[%s3270_s0 + $0x260] ss:$12 sps:$4 sm:$0xff]   ;;  %v2379_v39 = vld [vmem:[%s3270_s0 + $0x1fc] ss:$12 sps:$4 sm:$0xff]   ;;  %v2381_v40 = vld [vmem:[%s3270_s0 + $0x278] ss:$12 sps:$4 sm:$0xff]  }
  0x69   :  { %944 = vmatmul.mubr.bf16.gmra.mxu0 %v2300_v41  ;;  %1136 = vmatmul.mubr.bf16.gmra.mxu1 %v2301_v42  ;;  %v2382_v41 = vld [vmem:[%s3270_s0 + $0x1f8] ss:$12 sps:$4 sm:$0xff]   ;;  %v2383_v42 = vld [vmem:[%s3270_s0 + $0x290] ss:$12 sps:$4 sm:$0xff]  }
  0x6a   :  { %951 = vmatprep.mubr.bf16.mxu0 %v2302_v43  ;;  %1143 = vmatprep.mubr.bf16.mxu1 %v2304_v44  ;;  %v2384_v43 = vld [vmem:[%s3270_s0 + $0x214] ss:$12 sps:$4 sm:$0xff]  }
  0x6b   :  { %v2386_v44 = vld [vmem:[%s3270_s0 + $0x2a8] ss:$12 sps:$4 sm:$0xff]  }
  0x71   :  { %952 = vmatmul.mubr.bf16.gmra.mxu0 %v2306_v45  ;;  %1144 = vmatmul.mubr.bf16.gmra.mxu1 %v2307_v46  ;;  %v2387_v45 = vld [vmem:[%s3270_s0 + $0x210] ss:$12 sps:$4 sm:$0xff]   ;;  %v2388_v46 = vld [vmem:[%s3270_s0 + $0x2c0] ss:$12 sps:$4 sm:$0xff]  }
  0x72   :  { %959 = vmatprep.mubr.bf16.mxu0 %v2308_v47  ;;  %1151 = vmatprep.mubr.bf16.mxu1 %v2310_v48  ;;  %v2389_v47 = vld [vmem:[%s3270_s0 + $0x22c] ss:$12 sps:$4 sm:$0xff]  }
  0x73   :  { %v2391_v48 = vld [vmem:[%s3270_s0 + $0x2d8] ss:$12 sps:$4 sm:$0xff]  }
  0x79   :  { %960 = vmatmul.mubr.bf16.gmra.mxu0 %v2312_v49  ;;  %1152 = vmatmul.mubr.bf16.gmra.mxu1 %v2313_v50  ;;  %v2392_v49 = vld [vmem:[%s3270_s0 + $0x228] ss:$12 sps:$4 sm:$0xff]   ;;  %v2393_v50 = vld [vmem:[%s3270_s0 + $0x2f0] ss:$12 sps:$4 sm:$0xff]  }
  0x7a   :  { %967 = vmatprep.mubr.bf16.mxu0 %v2314_v51  ;;  %2151 = vmatprep.mubr.msk.bf16.mxu1 %vm774_vm0, %v2316_v52 }
  0x81   :  { %968 = vmatmul.mubr.bf16.gmra.mxu0 %v2317_v53  ;;  %2152 = vmatmul.mubr.msk.bf16.vlgmr.msra.gmra.mxu1 %vm774_vm0, %v2318_v54 }
  0x82   :  { %975 = vmatprep.mubr.bf16.mxu0 %v2319_v55  ;;  %2155 = vmatprep.mubr.msk.bf16.mxu1 %vm774_vm0, %v2321_v56 }
  0x89   :  { %976 = vmatmul.mubr.bf16.gmra.mxu0 %v2322_v57  ;;  %2156 = vmatmul.mubr.msk.bf16.gmra.mxu1 %vm774_vm0, %v2323_v58 }
  0x8a   :  { %983 = vmatprep.mubr.bf16.mxu0 %v2324_v59  ;;  %2159 = vmatprep.mubr.msk.bf16.mxu1 %vm774_vm0, %v2326_v60 }
  0x91   :  { %984 = vmatmul.mubr.bf16.gmra.mxu0 %v2327_v61  ;;  %2160 = vmatmul.mubr.msk.bf16.gmra.mxu1 %vm774_vm0, %v2328_v62 }
  0x92   :  { %991 = vmatprep.mubr.bf16.mxu0 %v2329_v63  ;;  %2163 = vmatprep.mubr.msk.bf16.mxu1 %vm774_vm0, %v2331_v0 }
  0x99   :  { %992 = vmatmul.mubr.bf16.gmra.mxu0 %v2332_v1  ;;  %2164 = vmatmul.mubr.msk.bf16.gmra.mxu1 %vm774_vm0, %v2333_v2 }
  0x9a   :  { %999 = vmatprep.mubr.bf16.mxu0 %v2334_v3  ;;  %2167 = vmatprep.mubr.msk.bf16.mxu1 %vm774_vm0, %v2336_v4 }
  0xa1   :  { %1000 = vmatmul.mubr.bf16.gmra.mxu0 %v2337_v5  ;;  %2168 = vmatmul.mubr.msk.bf16.gmra.mxu1 %vm774_vm0, %v2338_v6 }
  0xa2   :  { %1007 = vmatprep.mubr.bf16.mxu0 %v2339_v7  ;;  %2171 = vmatprep.mubr.msk.bf16.mxu1 %vm774_vm0, %v2341_v8 }
  0xa9   :  { %1008 = vmatmul.mubr.bf16.gmra.mxu0 %v2342_v9  ;;  %2172 = vmatmul.mubr.msk.bf16.gmra.mxu1 %vm774_vm0, %v2343_v10 }
  0xaa   :  { %1015 = vmatprep.mubr.bf16.mxu0 %v2344_v11  ;;  %2175 = vmatprep.mubr.msk.bf16.mxu1 %vm774_vm0, %v2346_v12 }
  0xb1   :  { %1016 = vmatmul.mubr.bf16.gmra.mxu0 %v2347_v13  ;;  %2176 = vmatmul.mubr.msk.bf16.gmra.mxu1 %vm774_vm0, %v2348_v14 }
  0xb2   :  { %1023 = vmatprep.mubr.bf16.mxu0 %v2349_v15  ;;  %2179 = vmatprep.mubr.msk.bf16.mxu1 %vm774_vm0, %v2351_v16 }
  0xb9   :  { %1024 = vmatmul.mubr.bf16.gmra.mxu0 %v2352_v17  ;;  %2180 = vmatmul.mubr.msk.bf16.gmra.mxu1 %vm774_vm0, %v2353_v18 }
  0xba   :  { %1031 = vmatprep.mubr.bf16.mxu0 %v2354_v19  ;;  %2183 = vmatprep.mubr.msk.bf16.mxu1 %vm774_vm0, %v2356_v20 }
  0xc1   :  { %1032 = vmatmul.mubr.bf16.gmra.mxu0 %v2357_v21  ;;  %2184 = vmatmul.mubr.msk.bf16.gmra.mxu1 %vm774_vm0, %v2358_v22 }
  0xc2   :  { %1039 = vmatprep.mubr.bf16.mxu0 %v2359_v23  ;;  %2187 = vmatprep.mubr.msk.bf16.mxu1 %vm774_vm0, %v2361_v24 }
  0xc9   :  { %1040 = vmatmul.mubr.bf16.gmra.mxu0 %v2362_v25  ;;  %2188 = vmatmul.mubr.msk.bf16.gmra.mxu1 %vm774_vm0, %v2363_v26 }
  0xca   :  { %1047 = vmatprep.mubr.bf16.mxu0 %v2364_v27  ;;  %2191 = vmatprep.mubr.msk.bf16.mxu1 %vm774_vm0, %v2366_v28 }
  0xd1   :  { %1048 = vmatmul.mubr.bf16.gmra.mxu0 %v2367_v29  ;;  %2192 = vmatmul.mubr.msk.bf16.gmra.mxu1 %vm774_vm0, %v2368_v30 }
  0xd2   :  { %1055 = vmatprep.mubr.bf16.mxu0 %v2369_v31  ;;  %2195 = vmatprep.mubr.msk.bf16.mxu1 %vm774_vm0, %v2371_v32 }
  0xd9   :  { %1056 = vmatmul.mubr.bf16.gmra.mxu0 %v2372_v33  ;;  %2196 = vmatmul.mubr.msk.bf16.gmra.mxu1 %vm774_vm0, %v2373_v34 }
  0xda   :  { %1063 = vmatprep.mubr.bf16.mxu0 %v2374_v35  ;;  %2199 = vmatprep.mubr.msk.bf16.mxu1 %vm774_vm0, %v2376_v36 }
  0xe1   :  { %1064 = vmatmul.mubr.bf16.gmra.mxu0 %v2377_v37  ;;  %2200 = vmatmul.mubr.msk.bf16.gmra.mxu1 %vm774_vm0, %v2378_v38 }
  0xe2   :  { %1071 = vmatprep.mubr.bf16.mxu0 %v2379_v39  ;;  %2203 = vmatprep.mubr.msk.bf16.mxu1 %vm774_vm0, %v2381_v40 }
  0xe9   :  { %1072 = vmatmul.mubr.bf16.gmra.mxu0 %v2382_v41  ;;  %2204 = vmatmul.mubr.msk.bf16.gmra.mxu1 %vm774_vm0, %v2383_v42 }
  0xea   :  { %1079 = vmatprep.mubr.bf16.mxu0 %v2384_v43  ;;  %2207 = vmatprep.mubr.msk.bf16.mxu1 %vm774_vm0, %v2386_v44 }
  0xf1   :  { %1080 = vmatmul.mubr.bf16.gmra.mxu0 %v2387_v45  ;;  %2208 = vmatmul.mubr.msk.bf16.gmra.mxu1 %vm774_vm0, %v2388_v46 }
  0xf2   :  { %1087 = vmatprep.mubr.bf16.mxu0 %v2389_v47  ;;  %2211 = vmatprep.mubr.msk.bf16.mxu1 %vm774_vm0, %v2391_v48 }
  0xf9   :  { %1088 = vmatmul.mubr.bf16.gmra.mxu0 %v2392_v49  ;;  %2212 = vmatmul.mubr.msk.bf16.gmra.mxu1 %vm774_vm0, %v2393_v50  ;;  %v2882_v49 = vld [vmem:[%s3271_s2] ss:$0 sm:$0xff] }
 0x101   :  { %v2821_v51 = vpop.f32.mrf.mxu0  ;;  %v2823_v52 = vpop.f32.mrf.mxu1 }
 0x103   :  { %v907_v53 = vpop.f32.mrf.mxu0  ;;  %v1099_v54 = vpop.f32.mrf.mxu1 }
 0x105   :  { %v2825_v55 = vpop.f32.mrf.mxu0  ;;  %v2827_v56 = vpop.f32.mrf.mxu1 }
 0x107   :  { %v910_v57 = vpop.f32.mrf.mxu0  ;;  %v1102_v58 = vpop.f32.mrf.mxu1 }
 0x109   :  { %v913_v59 = vpop.f32.mrf.mxu0  ;;  %v2829_v60 = vpop.f32.mrf.mxu1 }
 0x10a   :  { %v914_v54 = vadd.f32 %v2882_v49, %v913_v59  ;;  %v909_v59 = vadd.f32 %v2882_v49, %v2825_v55 }
 0x10b   :  { %v915_v61 = vpop.f32.mrf.mxu0  ;;  %v1107_v62 = vpop.f32.mrf.mxu1 }
 0x10c   :  { %v906_v61 = vadd.f32 %v2882_v49, %v2821_v51 }
 0x10d   :  { %v916_v63 = vpop.f32.mrf.mxu0  ;;  %v2831_v0 = vpop.f32.mrf.mxu1 }
 0x10f   :  { %v918_v1 = vpop.f32.mrf.mxu0  ;;  %v1110_v2 = vpop.f32.mrf.mxu1 }
 0x111   :  { %v2833_v3 = vpop.f32.mrf.mxu0  ;;  %v2835_v4 = vpop.f32.mrf.mxu1 }
 0x112   :  { %v922_v55 = vadd.f32 %v2882_v49, %v2833_v3 }
 0x113   :  { %v923_v5 = vpop.f32.mrf.mxu0  ;;  %v1115_v6 = vpop.f32.mrf.mxu1 }
 0x114   :  { %v917_v5 = vadd.f32 %v2882_v49, %v916_v63 }
 0x115   :  { %v2837_v7 = vpop.f32.mrf.mxu0  ;;  %v2839_v8 = vpop.f32.mrf.mxu1 }
 0x117   :  { %v926_v9 = vpop.f32.mrf.mxu0  ;;  %v1118_v10 = vpop.f32.mrf.mxu1 }
 0x119   :  { %v929_v11 = vpop.f32.mrf.mxu0  ;;  %v2841_v12 = vpop.f32.mrf.mxu1 }
 0x11a   :  { %v930_v51 = vadd.f32 %v2882_v49, %v929_v11 }
 0x11b   :  { %v931_v13 = vpop.f32.mrf.mxu0  ;;  %v1123_v14 = vpop.f32.mrf.mxu1 }
 0x11d   :  { %v2843_v15 = vpop.f32.mrf.mxu0  ;;  %v2845_v16 = vpop.f32.mrf.mxu1 }
 0x11f   :  { %v934_v17 = vpop.f32.mrf.mxu0  ;;  %v1126_v18 = vpop.f32.mrf.mxu1 }
 0x121   :  { %v2847_v19 = vpop.f32.mrf.mxu0  ;;  %v2849_v20 = vpop.f32.mrf.mxu1 }
 0x123   :  { %v939_v21 = vpop.f32.mrf.mxu0  ;;  %v1131_v22 = vpop.f32.mrf.mxu1 }
 0x125   :  { %v2851_v23 = vpop.f32.mrf.mxu0  ;;  %v2853_v24 = vpop.f32.mrf.mxu1 }
 0x127   :  { %v942_v25 = vpop.f32.mrf.mxu0  ;;  %v1134_v26 = vpop.f32.mrf.mxu1 }
 0x129   :  { %v2855_v27 = vpop.f32.mrf.mxu0  ;;  %v2857_v28 = vpop.f32.mrf.mxu1 }
 0x12b   :  { %v947_v29 = vpop.f32.mrf.mxu0  ;;  %v1139_v30 = vpop.f32.mrf.mxu1 }
 0x12d   :  { %v2859_v31 = vpop.f32.mrf.mxu0  ;;  %v2861_v32 = vpop.f32.mrf.mxu1 }
 0x12f   :  { %v950_v33 = vpop.f32.mrf.mxu0  ;;  %v1142_v34 = vpop.f32.mrf.mxu1 }
 0x131   :  { %v2863_v35 = vpop.f32.mrf.mxu0  ;;  %v2865_v36 = vpop.f32.mrf.mxu1 }
 0x133   :  { %v955_v37 = vpop.f32.mrf.mxu0  ;;  %v1147_v38 = vpop.f32.mrf.mxu1 }
 0x135   :  { %v2867_v39 = vpop.f32.mrf.mxu0  ;;  %v2869_v40 = vpop.f32.mrf.mxu1 }
 0x137   :  { %v958_v41 = vpop.f32.mrf.mxu0  ;;  %v1150_v42 = vpop.f32.mrf.mxu1 }
 0x138   :  { %v933_v41 = vadd.f32 %v2882_v49, %v2843_v15 }
 0x139   :  { %v2871_v43 = vpop.f32.mrf.mxu0  ;;  %v2873_v44 = vpop.f32.mrf.mxu1 }
 0x13b   :  { %v963_v45 = vpop.f32.mrf.mxu0  ;;  %v1155_v46 = vpop.f32.mrf.mxu1 }
 0x13d   :  { %v2875_v47 = vpop.f32.mrf.mxu0  ;;  %v2877_v48 = vpop.f32.mrf.mxu1 }
 0x13f   :  { %v966_v50 = vpop.f32.mrf.mxu0  ;;  %v1158_v53 = vpop.f32.mrf.mxu1 }
 0x140   :  { %v925_v53 = vadd.f32 %v2882_v49, %v2837_v7 }
 0x141   :  { %v2885_v57 = vpop.f32.mrf.mxu0  ;;  %v2153_v58 = vpop.f32.mrf.mxu1 }
 0x142   :  { %v1203_v62 = vadd.f32 %v2153_v58, %v914_v54 }
 0x143   :  { %v971_v1 = vpop.f32.mrf.mxu0  ;;  %v1194_v2 = vpop.f32.mrf.mxu1 }
 0x144   :  { %v1451_v6 = vmax.f32 %v1203_v62, 0.0  ;;  %v1195_v9 = vadd.f32 %v1194_v2, %v906_v61  ;;  %v946_v1 = vadd.f32 %v2882_v49, %v2855_v27 }
 0x145   :  { %v2890_v10 = vpop.f32.mrf.mxu0  ;;  %v2154_v13 = vpop.f32.mrf.mxu1 }
 0x146   :  { %v2051_v14 = vpack.c.bf16 %v1451_v6, %v1451_v6  ;;  %v1449_v17 = vmax.f32 %v1195_v9, 0.0  ;;  %v1206_v18 = vadd.f32 %v2154_v13, %v917_v5  ;;  %v938_v13 = vadd.f32 %v2882_v49, %v2847_v19 }
 0x147   :  { %v974_v21 = vpop.f32.mrf.mxu0  ;;  %v1197_v22 = vpop.f32.mrf.mxu1 }
 0x148   :  { %1772 = vst.msk [vmem:[%s3272_s3 + $0x8] sm:$0xf] %vm1769_vm1, %v2051_v14  ;;  %v2049_v63 = vpack.c.bf16 %v1449_v17, %v1449_v17  ;;  %v1452_v25 = vmax.f32 %v1206_v18, 0.0  ;;  %v1198_v26 = vadd.f32 %v1197_v22, %v909_v59  ;;  %v949_v21 = vadd.f32 %v2882_v49, %v2859_v31 }
 0x149   :  { %v2899_v29 = vpop.f32.mrf.mxu0  ;;  %v2157_v30 = vpop.f32.mrf.mxu1 }
 0x14a   :  { %1770 = vst.msk [vmem:[%s3272_s3] sm:$0xf] %vm1769_vm1, %v2049_v63  ;;  %v2052_v11 = vpack.c.bf16 %v1452_v25, %v1452_v25  ;;  %v1450_v33 = vmax.f32 %v1198_v26, 0.0  ;;  %v1219_v34 = vadd.f32 %v2157_v30, %v930_v51  ;;  %v941_v26 = vadd.f32 %v2882_v49, %v2851_v23 }
 0x14b   :  { %v979_v37 = vpop.f32.mrf.mxu0  ;;  %v1210_v38 = vpop.f32.mrf.mxu1 }
 0x14c   :  { %1773 = vst.msk [vmem:[%s3272_s3 + $0xc] sm:$0xf] %vm1769_vm1, %v2052_v11  ;;  %v2050_v42 = vpack.c.bf16 %v1450_v33, %v1450_v33  ;;  %v1455_v3 = vmax.f32 %v1219_v34, 0.0  ;;  %v1211_v45 = vadd.f32 %v1210_v38, %v922_v55  ;;  %v962_v34 = vadd.f32 %v2882_v49, %v2871_v43 }
 0x14d   :  { %v2913_v46 = vpop.f32.mrf.mxu0  ;;  %v2158_v50 = vpop.f32.mrf.mxu1 }
 0x14e   :  { %1771 = vst.msk [vmem:[%s3272_s3 + $0x4] sm:$0xf] %vm1769_vm1, %v2050_v42  ;;  %v2055_v15 = vpack.c.bf16 %v1455_v3, %v1455_v3  ;;  %v1453_v54 = vmax.f32 %v1211_v45, 0.0  ;;  %v1222_v58 = vadd.f32 %v2158_v50, %v933_v41  ;;  %v954_v3 = vadd.f32 %v2882_v49, %v2863_v35 }
 0x14f   :  { %v982_v61 = vpop.f32.mrf.mxu0  ;;  %v1213_v62 = vpop.f32.mrf.mxu1 }
 0x150   :  { %1776 = vst.msk [vmem:[%s3272_s3 + $0x18] sm:$0xf] %vm1769_vm1, %v2055_v15  ;;  %v2053_v2 = vpack.c.bf16 %v1453_v54, %v1453_v54  ;;  %v1456_v7 = vmax.f32 %v1222_v58, 0.0  ;;  %v1214_v5 = vadd.f32 %v1213_v62, %v925_v53  ;;  %v965_v54 = vadd.f32 %v2882_v49, %v2875_v47 }
 0x151   :  { %v2927_v6 = vpop.f32.mrf.mxu0  ;;  %v2161_v9 = vpop.f32.mrf.mxu1 }
 0x152   :  { %1774 = vst.msk [vmem:[%s3272_s3 + $0x10] sm:$0xf] %vm1769_vm1, %v2053_v2  ;;  %v2056_v27 = vpack.c.bf16 %v1456_v7, %v1456_v7  ;;  %v1454_v59 = vmax.f32 %v1214_v5, 0.0  ;;  %v1235_v14 = vadd.f32 %v2161_v9, %v946_v1  ;;  %v957_v2 = vadd.f32 %v2882_v49, %v2867_v39 }
 0x153   :  { %v987_v17 = vpop.f32.mrf.mxu0  ;;  %v1226_v18 = vpop.f32.mrf.mxu1 }
 0x154   :  { %1777 = vst.msk [vmem:[%s3272_s3 + $0x1c] sm:$0xf] %vm1769_vm1, %v2056_v27  ;;  %v2054_v22 = vpack.c.bf16 %v1454_v59, %v1454_v59  ;;  %v1459_v19 = vmax.f32 %v1235_v14, 0.0  ;;  %v1227_v51 = vadd.f32 %v1226_v18, %v938_v13  ;;  %v978_v27 = vadd.f32 %v2882_v49, %v2899_v29 }
 0x155   :  { %v2941_v63 = vpop.f32.mrf.mxu0  ;;  %v2162_v25 = vpop.f32.mrf.mxu1 }
 0x156   :  { %1775 = vst.msk [vmem:[%s3272_s3 + $0x14] sm:$0xf] %vm1769_vm1, %v2054_v22  ;;  %v2059_v31 = vpack.c.bf16 %v1459_v19, %v1459_v19  ;;  %v1457_v30 = vmax.f32 %v1227_v51, 0.0  ;;  %v1238_v55 = vadd.f32 %v2162_v25, %v949_v21  ;;  %v970_v21 = vadd.f32 %v2882_v49, %v2885_v57 }
 0x157   :  { %v990_v11 = vpop.f32.mrf.mxu0  ;;  %v1229_v33 = vpop.f32.mrf.mxu1 }
 0x158   :  { %1780 = vst.msk [vmem:[%s3272_s3 + $0x28] sm:$0xf] %vm1769_vm1, %v2059_v31  ;;  %v2057_v37 = vpack.c.bf16 %v1457_v30, %v1457_v30  ;;  %v1460_v23 = vmax.f32 %v1238_v55, 0.0  ;;  %v1230_v38 = vadd.f32 %v1229_v33, %v941_v26  ;;  %v981_v26 = vadd.f32 %v2882_v49, %v2913_v46 }
 0x159   :  { %v993_v41 = vpop.f32.mrf.mxu0  ;;  %v2165_v42 = vpop.f32.mrf.mxu1  ;;  %v973_v33 = vadd.f32 %v2882_v49, %v2890_v10 }
 0x15a   :  { %1778 = vst.msk [vmem:[%s3272_s3 + $0x20] sm:$0xf] %vm1769_vm1, %v2057_v37  ;;  %v2060_v45 = vpack.c.bf16 %v1460_v23, %v1460_v23  ;;  %v1458_v43 = vmax.f32 %v1230_v38, 0.0  ;;  %v1251_v50 = vadd.f32 %v2165_v42, %v962_v34  ;;  %v994_v42 = vadd.f32 %v2882_v49, %v993_v41 }
 0x15b   :  { %v995_v53 = vpop.f32.mrf.mxu0  ;;  %v1242_v15 = vpop.f32.mrf.mxu1 }
 0x15c   :  { %1781 = vst.msk [vmem:[%s3272_s3 + $0x2c] sm:$0xf] %vm1769_vm1, %v2060_v45  ;;  %v2058_v58 = vpack.c.bf16 %v1458_v43, %v1458_v43  ;;  %v1463_v35 = vmax.f32 %v1251_v50, 0.0  ;;  %v1243_v61 = vadd.f32 %v1242_v15, %v954_v3  ;;  %v986_v53 = vadd.f32 %v2882_v49, %v2927_v6 }
 0x15d   :  { %v996_v62 = vpop.f32.mrf.mxu0  ;;  %v2166_v1 = vpop.f32.mrf.mxu1 }
 0x15e   :  { %1779 = vst.msk [vmem:[%s3272_s3 + $0x24] sm:$0xf] %vm1769_vm1, %v2058_v58  ;;  %v2063_v7 = vpack.c.bf16 %v1463_v35, %v1463_v35  ;;  %v1461_v47 = vmax.f32 %v1243_v61, 0.0  ;;  %v1254_v5 = vadd.f32 %v2166_v1, %v965_v54  ;;  %v997_v61 = vadd.f32 %v2882_v49, %v996_v62 }
 0x15f   :  { %v998_v9 = vpop.f32.mrf.mxu0  ;;  %v1245_v13 = vpop.f32.mrf.mxu1 }
 0x160   :  { %1784 = vst.msk [vmem:[%s3272_s3 + $0x38] sm:$0xf] %vm1769_vm1, %v2063_v7  ;;  %v2061_v59 = vpack.c.bf16 %v1461_v47, %v1461_v47  ;;  %v1464_v39 = vmax.f32 %v1254_v5, 0.0  ;;  %v1246_v14 = vadd.f32 %v1245_v13, %v957_v2  ;;  %v989_v5 = vadd.f32 %v2882_v49, %v2941_v63 }
 0x161   :  { %v1001_v17 = vpop.f32.mrf.mxu0  ;;  %v2169_v18 = vpop.f32.mrf.mxu1 }
 0x162   :  { %1782 = vst.msk [vmem:[%s3272_s3 + $0x30] sm:$0xf] %vm1769_vm1, %v2061_v59  ;;  %v2064_v22 = vpack.c.bf16 %v1464_v39, %v1464_v39  ;;  %v1462_v29 = vmax.f32 %v1246_v14, 0.0  ;;  %v1267_v19 = vadd.f32 %v2169_v18, %v978_v27 }
 0x163   :  { %v1003_v51 = vpop.f32.mrf.mxu0  ;;  %v1258_v25 = vpop.f32.mrf.mxu1 }
 0x164   :  { %1785 = vst.msk [vmem:[%s3272_s3 + $0x3c] sm:$0xf] %vm1769_vm1, %v2064_v22  ;;  %v2062_v31 = vpack.c.bf16 %v1462_v29, %v1462_v29  ;;  %v1467_v57 = vmax.f32 %v1267_v19, 0.0  ;;  %v1259_v30 = vadd.f32 %v1258_v25, %v970_v21  ;;  %v1002_v29 = vadd.f32 %v2882_v49, %v1001_v17 }
 0x165   :  { %v1004_v55 = vpop.f32.mrf.mxu0  ;;  %v2170_v11 = vpop.f32.mrf.mxu1 }
 0x166   :  { %1783 = vst.msk [vmem:[%s3272_s3 + $0x34] sm:$0xf] %vm1769_vm1, %v2062_v31  ;;  %v2067_v34 = vpack.c.bf16 %v1467_v57, %v1467_v57  ;;  %v1465_v46 = vmax.f32 %v1259_v30, 0.0  ;;  %v1270_v37 = vadd.f32 %v2170_v11, %v981_v26 }
 0x167   :  { %v1006_v23 = vpop.f32.mrf.mxu0  ;;  %v1261_v38 = vpop.f32.mrf.mxu1 }
 0x168   :  { %1788 = vst.msk [vmem:[%s3272_s3 + $0x48] sm:$0xf] %vm1769_vm1, %v2067_v34  ;;  %v2065_v3 = vpack.c.bf16 %v1465_v46, %v1465_v46  ;;  %v1468_v45 = vmax.f32 %v1270_v37, 0.0  ;;  %v1262_v10 = vadd.f32 %v1261_v38, %v973_v33  ;;  %v1005_v46 = vadd.f32 %v2882_v49, %v1004_v55 }
 0x169   :  { %v1009_v43 = vpop.f32.mrf.mxu0  ;;  %v2173_v50 = vpop.f32.mrf.mxu1 }
 0x16a   :  { %1786 = vst.msk [vmem:[%s3272_s3 + $0x40] sm:$0xf] %vm1769_vm1, %v2065_v3  ;;  %v2068_v15 = vpack.c.bf16 %v1468_v45, %v1468_v45  ;;  %v1466_v41 = vmax.f32 %v1262_v10, 0.0  ;;  %v1283_v54 = vadd.f32 %v2173_v50, %v994_v42  ;;  %v1010_v39 = vadd.f32 %v2882_v49, %v1009_v43 }
 0x16b   :  { %v1011_v58 = vpop.f32.mrf.mxu0  ;;  %v1274_v35 = vpop.f32.mrf.mxu1 }
 0x16c   :  { %1789 = vst.msk [vmem:[%s3272_s3 + $0x4c] sm:$0xf] %vm1769_vm1, %v2068_v15  ;;  %v2066_v1 = vpack.c.bf16 %v1466_v41, %v1466_v41  ;;  %v1471_v2 = vmax.f32 %v1283_v54, 0.0  ;;  %v1275_v6 = vadd.f32 %v1274_v35, %v986_v53 }
 0x16d   :  { %v1012_v7 = vpop.f32.mrf.mxu0  ;;  %v2174_v47 = vpop.f32.mrf.mxu1 }
 0x16e   :  { %1787 = vst.msk [vmem:[%s3272_s3 + $0x44] sm:$0xf] %vm1769_vm1, %v2066_v1  ;;  %v2071_v9 = vpack.c.bf16 %v1471_v2, %v1471_v2  ;;  %v1469_v62 = vmax.f32 %v1275_v6, 0.0  ;;  %v1286_v13 = vadd.f32 %v2174_v47, %v997_v61  ;;  %v1013_v57 = vadd.f32 %v2882_v49, %v1012_v7 }
 0x16f   :  { %v1014_v27 = vpop.f32.mrf.mxu0  ;;  %v1277_v59 = vpop.f32.mrf.mxu1 }
 0x170   :  { %1792 = vst.msk [vmem:[%s3272_s3 + $0x58] sm:$0xf] %vm1769_vm1, %v2071_v9  ;;  %v2069_v14 = vpack.c.bf16 %v1469_v62, %v1469_v62  ;;  %v1472_v18 = vmax.f32 %v1286_v13, 0.0  ;;  %v1278_v63 = vadd.f32 %v1277_v59, %v989_v5 }
 0x171   :  { %v1017_v21 = vpop.f32.mrf.mxu0  ;;  %v2177_v22 = vpop.f32.mrf.mxu1 }
 0x172   :  { %1790 = vst.msk [vmem:[%s3272_s3 + $0x50] sm:$0xf] %vm1769_vm1, %v2069_v14  ;;  %v2072_v19 = vpack.c.bf16 %v1472_v18, %v1472_v18  ;;  %v1470_v51 = vmax.f32 %v1278_v63, 0.0  ;;  %v1299_v25 = vadd.f32 %v2177_v22, %v1010_v39  ;;  %v1018_v53 = vadd.f32 %v2882_v49, %v1017_v21 }
 0x173   :  { %v1019_v26 = vpop.f32.mrf.mxu0  ;;  %v1290_v31 = vpop.f32.mrf.mxu1 }
 0x174   :  { %1793 = vst.msk [vmem:[%s3272_s3 + $0x5c] sm:$0xf] %vm1769_vm1, %v2072_v19  ;;  %v2070_v30 = vpack.c.bf16 %v1470_v51, %v1470_v51  ;;  %v1475_v11 = vmax.f32 %v1299_v25, 0.0  ;;  %v1291_v17 = vadd.f32 %v1290_v31, %v1002_v29 }
 0x175   :  { %v1020_v33 = vpop.f32.mrf.mxu0  ;;  %v2178_v34 = vpop.f32.mrf.mxu1 }
 0x176   :  { %1791 = vst.msk [vmem:[%s3272_s3 + $0x54] sm:$0xf] %vm1769_vm1, %v2070_v30  ;;  %v2075_v37 = vpack.c.bf16 %v1475_v11, %v1475_v11  ;;  %v1473_v23 = vmax.f32 %v1291_v17, 0.0  ;;  %v1302_v38 = vadd.f32 %v2178_v34, %v1013_v57  ;;  %v1021_v47 = vadd.f32 %v2882_v49, %v1020_v33 }
 0x177   :  { %v1022_v42 = vpop.f32.mrf.mxu0  ;;  %v1293_v3 = vpop.f32.mrf.mxu1 }
 0x178   :  { %1796 = vst.msk [vmem:[%s3272_s3 + $0x68] sm:$0xf] %vm1769_vm1, %v2075_v37  ;;  %v2073_v45 = vpack.c.bf16 %v1473_v23, %v1473_v23  ;;  %v1476_v10 = vmax.f32 %v1302_v38, 0.0  ;;  %v1294_v43 = vadd.f32 %v1293_v3, %v1005_v46 }
 0x179   :  { %v1025_v50 = vpop.f32.mrf.mxu0  ;;  %v2181_v55 = vpop.f32.mrf.mxu1 }
 0x17a   :  { %1794 = vst.msk [vmem:[%s3272_s3 + $0x60] sm:$0xf] %vm1769_vm1, %v2073_v45  ;;  %v2076_v15 = vpack.c.bf16 %v1476_v10, %v1476_v10  ;;  %v1474_v41 = vmax.f32 %v1294_v43, 0.0  ;;  %v1026_v54 = vadd.f32 %v2882_v49, %v1025_v50 }
 0x17b   :  { %v1027_v58 = vpop.f32.mrf.mxu0  ;;  %v1306_v35 = vpop.f32.mrf.mxu1 }
 0x17c   :  { %1797 = vst.msk [vmem:[%s3272_s3 + $0x6c] sm:$0xf] %vm1769_vm1, %v2076_v15  ;;  %v2074_v61 = vpack.c.bf16 %v1474_v41, %v1474_v41  ;;  %v1315_v1 = vadd.f32 %v2181_v55, %v1026_v54  ;;  %v1307_v2 = vadd.f32 %v1306_v35, %v1018_v53 }
 0x17d   :  { %v1028_v6 = vpop.f32.mrf.mxu0  ;;  %v2182_v7 = vpop.f32.mrf.mxu1 }
 0x17e   :  { %1795 = vst.msk [vmem:[%s3272_s3 + $0x64] sm:$0xf] %vm1769_vm1, %v2074_v61  ;;  %v1479_v5 = vmax.f32 %v1315_v1, 0.0  ;;  %v1477_v9 = vmax.f32 %v1307_v2, 0.0  ;;  %v1029_v62 = vadd.f32 %v2882_v49, %v1028_v6 }
 0x17f   :  { %v1030_v13 = vpop.f32.mrf.mxu0  ;;  %v1309_v27 = vpop.f32.mrf.mxu1 }
 0x180   :  { %v2079_v59 = vpack.c.bf16 %v1479_v5, %v1479_v5  ;;  %v2077_v39 = vpack.c.bf16 %v1477_v9, %v1477_v9  ;;  %v1318_v14 = vadd.f32 %v2182_v7, %v1029_v62  ;;  %v1310_v18 = vadd.f32 %v1309_v27, %v1021_v47 }
 0x181   :  { %v1033_v63 = vpop.f32.mrf.mxu0  ;;  %v2185_v21 = vpop.f32.mrf.mxu1 }
 0x182   :  { %1800 = vst.msk [vmem:[%s3272_s3 + $0x78] sm:$0xf] %vm1769_vm1, %v2079_v59  ;;  %1798 = vst.msk [vmem:[%s3272_s3 + $0x70] sm:$0xf] %vm1769_vm1, %v2077_v39  ;;  %v1480_v22 = vmax.f32 %v1318_v14, 0.0  ;;  %v1478_v29 = vmax.f32 %v1310_v18, 0.0  ;;  %v1034_v19 = vadd.f32 %v2882_v49, %v1033_v63 }
 0x183   :  { %v1035_v51 = vpop.f32.mrf.mxu0  ;;  %v1322_v25 = vpop.f32.mrf.mxu1 }
 0x184   :  { %v2080_v26 = vpack.c.bf16 %v1480_v22, %v1480_v22  ;;  %v2078_v31 = vpack.c.bf16 %v1478_v29, %v1478_v29  ;;  %v1323_v57 = vadd.f32 %v1322_v25, %v1034_v19 }
 0x185   :  { %v1036_v30 = vpop.f32.mrf.mxu0  ;;  %v2186_v11 = vpop.f32.mrf.mxu1 }
 0x186   :  { %1801 = vst.msk [vmem:[%s3272_s3 + $0x7c] sm:$0xf] %vm1769_vm1, %v2080_v26  ;;  %1799 = vst.msk [vmem:[%s3272_s3 + $0x74] sm:$0xf] %vm1769_vm1, %v2078_v31  ;;  %v1481_v17 = vmax.f32 %v1323_v57, 0.0  ;;  %v1037_v33 = vadd.f32 %v2882_v49, %v1036_v30 }
 0x187   :  { %v1038_v34 = vpop.f32.mrf.mxu0  ;;  %v1325_v46 = vpop.f32.mrf.mxu1 }
 0x188   :  { %v2081_v37 = vpack.c.bf16 %v1481_v17, %v1481_v17  ;;  %v1326_v23 = vadd.f32 %v1325_v46, %v1037_v33 }
 0x189   :  { %v1041_v38 = vpop.f32.mrf.mxu0  ;;  %v2189_v42 = vpop.f32.mrf.mxu1 }
 0x18a   :  { %1802 = vst.msk [vmem:[%s3272_s3 + $0x80] sm:$0xf] %vm1769_vm1, %v2081_v37  ;;  %v1482_v3 = vmax.f32 %v1326_v23, 0.0  ;;  %v1042_v45 = vadd.f32 %v2882_v49, %v1041_v38  ;;  %v1106_v23 = vadd.f32 %v2882_v49, %v2829_v60 }
 0x18b   :  { %v1043_v10 = vpop.f32.mrf.mxu0  ;;  %v1338_v43 = vpop.f32.mrf.mxu1 }
 0x18c   :  { %v2082_v50 = vpack.c.bf16 %v1482_v3, %v1482_v3  ;;  %v1331_v55 = vadd.f32 %v2185_v21, %v1042_v45  ;;  %v1098_v10 = vadd.f32 %v2882_v49, %v2823_v52  ;;  %v1109_v52 = vadd.f32 %v2882_v49, %v2831_v0 }
 0x18d   :  { %v1044_v53 = vpop.f32.mrf.mxu0  ;;  %v2190_v15 = vpop.f32.mrf.mxu1 }
 0x18e   :  { %1803 = vst.msk [vmem:[%s3272_s3 + $0x84] sm:$0xf] %vm1769_vm1, %v2082_v50  ;;  %v1483_v41 = vmax.f32 %v1331_v55, 0.0  ;;  %v1045_v54 = vadd.f32 %v2882_v49, %v1044_v53 }
 0x18f   :  { %v1046_v58 = vpop.f32.mrf.mxu0  ;;  %v1341_v35 = vpop.f32.mrf.mxu1 }
 0x190   :  { %v2083_v61 = vpack.c.bf16 %v1483_v41, %v1483_v41  ;;  %v1334_v1 = vadd.f32 %v2186_v11, %v1045_v54 }
 0x191   :  { %v1049_v2 = vpop.f32.mrf.mxu0  ;;  %v3087_v6 = vpop.f32.mrf.mxu1 }
 0x192   :  { %1804 = vst.msk [vmem:[%s3272_s3 + $0x88] sm:$0xf] %vm1769_vm1, %v2083_v61  ;;  %v1484_v7 = vmax.f32 %v1334_v1, 0.0  ;;  %v1050_v47 = vadd.f32 %v2882_v49, %v1049_v2 }
 0x193   :  { %v1051_v5 = vpop.f32.mrf.mxu0  ;;  %v1354_v9 = vpop.f32.mrf.mxu1 }
 0x194   :  { %v2084_v62 = vpack.c.bf16 %v1484_v7, %v1484_v7  ;;  %v1339_v13 = vadd.f32 %v1338_v43, %v1050_v47 }
 0x195   :  { %v1052_v27 = vpop.f32.mrf.mxu0  ;;  %v3094_v59 = vpop.f32.mrf.mxu1 }
 0x196   :  { %1805 = vst.msk [vmem:[%s3272_s3 + $0x8c] sm:$0xf] %vm1769_vm1, %v2084_v62  ;;  %v1485_v39 = vmax.f32 %v1339_v13, 0.0  ;;  %v1053_v14 = vadd.f32 %v2882_v49, %v1052_v27 }
 0x197   :  { %v1054_v18 = vpop.f32.mrf.mxu0  ;;  %v1357_v63 = vpop.f32.mrf.mxu1 }
 0x198   :  { %v2085_v21 = vpack.c.bf16 %v1485_v39, %v1485_v39  ;;  %v1342_v22 = vadd.f32 %v1341_v35, %v1053_v14  ;;  %v1101_v35 = vadd.f32 %v2882_v49, %v2827_v56 }
 0x199   :  { %v1057_v29 = vpop.f32.mrf.mxu0  ;;  %v3101_v19 = vpop.f32.mrf.mxu1 }
 0x19a   :  { %1806 = vst.msk [vmem:[%s3272_s3 + $0x90] sm:$0xf] %vm1769_vm1, %v2085_v21  ;;  %v1486_v51 = vmax.f32 %v1342_v22, 0.0  ;;  %v1058_v25 = vadd.f32 %v2882_v49, %v1057_v29 }
 0x19b   :  { %v1059_v26 = vpop.f32.mrf.mxu0  ;;  %v3108_v31 = vpop.f32.mrf.mxu1 }
 0x19c   :  { %v2086_v57 = vpack.c.bf16 %v1486_v51, %v1486_v51  ;;  %v1347_v30 = vadd.f32 %v2189_v42, %v1058_v25  ;;  %v1125_v26 = vadd.f32 %v2882_v49, %v2845_v16 }
 0x19d   :  { %v1060_v11 = vpop.f32.mrf.mxu0  ;;  %v3110_v17 = vpop.f32.mrf.mxu1 }
 0x19e   :  { %1807 = vst.msk [vmem:[%s3272_s3 + $0x94] sm:$0xf] %vm1769_vm1, %v2086_v57  ;;  %v1487_v33 = vmax.f32 %v1347_v30, 0.0  ;;  %v1061_v34 = vadd.f32 %v2882_v49, %v1060_v11 }
 0x19f   :  { %v1062_v46 = vpop.f32.mrf.mxu0  ;;  %v3117_v37 = vpop.f32.mrf.mxu1 }
 0x1a0   :  { %v2087_v38 = vpack.c.bf16 %v1487_v33, %v1487_v33  ;;  %v1350_v3 = vadd.f32 %v2190_v15, %v1061_v34 }
 0x1a1   :  { %v1065_v42 = vpop.f32.mrf.mxu0  ;;  %v2201_v45 = vpop.f32.mrf.mxu1 }
 0x1a2   :  { %1808 = vst.msk [vmem:[%s3272_s3 + $0x98] sm:$0xf] %vm1769_vm1, %v2087_v38  ;;  %v1488_v43 = vmax.f32 %v1350_v3, 0.0  ;;  %v1066_v50 = vadd.f32 %v2882_v49, %v1065_v42  ;;  %v1395_v55 = vadd.f32 %v2201_v45, %v1106_v23  ;;  %v1117_v38 = vadd.f32 %v2882_v49, %v2839_v8 }
 0x1a3   :  { %v1067_v53 = vpop.f32.mrf.mxu0  ;;  %v1386_v41 = vpop.f32.mrf.mxu1 }
 0x1a4   :  { %v2088_v54 = vpack.c.bf16 %v1488_v43, %v1488_v43  ;;  %v1355_v60 = vadd.f32 %v1354_v9, %v1066_v50  ;;  %v1499_v58 = vmax.f32 %v1395_v55, 0.0  ;;  %v1387_v15 = vadd.f32 %v1386_v41, %v1098_v10 }
 0x1a5   :  { %v1068_v61 = vpop.f32.mrf.mxu0  ;;  %v2202_v1 = vpop.f32.mrf.mxu1  ;;  %v1122_v9 = vadd.f32 %v2882_v49, %v2841_v12 }
 0x1a6   :  { %1809 = vst.msk [vmem:[%s3272_s3 + $0x9c] sm:$0xf] %vm1769_vm1, %v2088_v54  ;;  %v1489_v2 = vmax.f32 %v1355_v60, 0.0  ;;  %v2099_v7 = vpack.c.bf16 %v1499_v58, %v1499_v58  ;;  %v1497_v47 = vmax.f32 %v1387_v15, 0.0  ;;  %v1069_v5 = vadd.f32 %v2882_v49, %v1068_v61 }
 0x1a7   :  { %v1398_v62 = vadd.f32 %v2202_v1, %v1109_v52  ;;  %v1070_v56 = vpop.f32.mrf.mxu0  ;;  %v1389_v13 = vpop.f32.mrf.mxu1  ;;  %v1130_v60 = vadd.f32 %v2882_v49, %v2849_v20  ;;  %v1138_v58 = vadd.f32 %v2882_v49, %v2857_v28 }
 0x1a8   :  { %v2089_v27 = vpack.c.bf16 %v1489_v2, %v1489_v2  ;;  %1820 = vst.msk [vmem:[%s3272_s3 + $0xc8] sm:$0xf] %vm1769_vm1, %v2099_v7  ;;  %v2097_v0 = vpack.c.bf16 %v1497_v47, %v1497_v47  ;;  %v1358_v39 = vadd.f32 %v1357_v63, %v1069_v5  ;;  %v1390_v14 = vadd.f32 %v1389_v13, %v1101_v35 }
 0x1a9   :  { %v1500_v18 = vmax.f32 %v1398_v62, 0.0  ;;  %v1073_v21 = vpop.f32.mrf.mxu0  ;;  %v2205_v22 = vpop.f32.mrf.mxu1  ;;  %v1114_v63 = vadd.f32 %v2882_v49, %v2835_v4  ;;  %v1141_v7 = vadd.f32 %v2882_v49, %v2861_v32 }
 0x1aa   :  { %1810 = vst.msk [vmem:[%s3272_s3 + $0xa0] sm:$0xf] %vm1769_vm1, %v2089_v27  ;;  %1818 = vst.msk [vmem:[%s3272_s3 + $0xc0] sm:$0xf] %vm1769_vm1, %v2097_v0  ;;  %v1490_v12 = vmax.f32 %v1358_v39, 0.0  ;;  %v1498_v29 = vmax.f32 %v1390_v14, 0.0  ;;  %v1074_v51 = vadd.f32 %v2882_v49, %v1073_v21  ;;  %v1411_v25 = vadd.f32 %v2205_v22, %v1122_v9 }
 0x1ab   :  { %v2100_v57 = vpack.c.bf16 %v1500_v18, %v1500_v18  ;;  %v1075_v30 = vpop.f32.mrf.mxu0  ;;  %v1402_v11 = vpop.f32.mrf.mxu1  ;;  %v1154_v21 = vadd.f32 %v2882_v49, %v2873_v44 }
 0x1ac   :  { %v2090_v33 = vpack.c.bf16 %v1490_v12, %v1490_v12  ;;  %v2098_v34 = vpack.c.bf16 %v1498_v29, %v1498_v29  ;;  %v1363_v46 = vadd.f32 %v3087_v6, %v1074_v51  ;;  %v1503_v23 = vmax.f32 %v1411_v25, 0.0 }
 0x1ad   :  { %1821 = vst.msk [vmem:[%s3272_s3 + $0xcc] sm:$0xf] %vm1769_vm1, %v2100_v57  ;;  %v1403_v4 = vadd.f32 %v1402_v11, %v1114_v63  ;;  %v1076_v3 = vpop.f32.mrf.mxu0  ;;  %v2206_v42 = vpop.f32.mrf.mxu1  ;;  %v1146_v57 = vadd.f32 %v2882_v49, %v2865_v36 }
 0x1ae   :  { %1811 = vst.msk [vmem:[%s3272_s3 + $0xa4] sm:$0xf] %vm1769_vm1, %v2090_v33  ;;  %1819 = vst.msk [vmem:[%s3272_s3 + $0xc4] sm:$0xf] %vm1769_vm1, %v2098_v34  ;;  %v1491_v16 = vmax.f32 %v1363_v46, 0.0  ;;  %v2103_v8 = vpack.c.bf16 %v1503_v23, %v1503_v23  ;;  %v1077_v6 = vadd.f32 %v2882_v49, %v1076_v3  ;;  %v1414_v45 = vadd.f32 %v2206_v42, %v1125_v26 }
 0x1af   :  { %v1501_v10 = vmax.f32 %v1403_v4, 0.0  ;;  %v1078_v43 = vpop.f32.mrf.mxu0  ;;  %v1405_v50 = vpop.f32.mrf.mxu1 }
 0x1b0   :  { %v2091_v55 = vpack.c.bf16 %v1491_v16, %v1491_v16  ;;  %1824 = vst.msk [vmem:[%s3272_s3 + $0xd8] sm:$0xf] %vm1769_vm1, %v2103_v8  ;;  %v1366_v53 = vadd.f32 %v3094_v59, %v1077_v6  ;;  %v1504_v41 = vmax.f32 %v1414_v45, 0.0  ;;  %v1406_v54 = vadd.f32 %v1405_v50, %v1117_v38 }
 0x1b1   :  { %v2101_v15 = vpack.c.bf16 %v1501_v10, %v1501_v10  ;;  %v1081_v35 = vpop.f32.mrf.mxu0  ;;  %v2209_v52 = vpop.f32.mrf.mxu1  ;;  %v1149_v16 = vadd.f32 %v2882_v49, %v2869_v40  ;;  %v1157_v8 = vadd.f32 %v2882_v49, %v2877_v48 }
 0x1b2   :  { %1812 = vst.msk [vmem:[%s3272_s3 + $0xa8] sm:$0xf] %vm1769_vm1, %v2091_v55  ;;  %v1492_v61 = vmax.f32 %v1366_v53, 0.0  ;;  %v2104_v1 = vpack.c.bf16 %v1504_v41, %v1504_v41  ;;  %v1502_v2 = vmax.f32 %v1406_v54, 0.0  ;;  %v1082_v59 = vadd.f32 %v2882_v49, %v1081_v35 }
 0x1b3   :  { %1822 = vst.msk [vmem:[%s3272_s3 + $0xd0] sm:$0xf] %vm1769_vm1, %v2101_v15  ;;  %v1427_v20 = vadd.f32 %v2209_v52, %v1138_v58  ;;  %v1083_v28 = vpop.f32.mrf.mxu0  ;;  %v1418_v47 = vpop.f32.mrf.mxu1 }
 0x1b4   :  { %v2092_v5 = vpack.c.bf16 %v1492_v61, %v1492_v61  ;;  %1825 = vst.msk [vmem:[%s3272_s3 + $0xdc] sm:$0xf] %vm1769_vm1, %v2104_v1  ;;  %v2102_v9 = vpack.c.bf16 %v1502_v2, %v1502_v2  ;;  %v1371_v62 = vadd.f32 %v3108_v31, %v1082_v59  ;;  %v1419_v56 = vadd.f32 %v1418_v47, %v1130_v60 }
 0x1b5   :  { %v1507_v13 = vmax.f32 %v1427_v20, 0.0  ;;  %v1084_v32 = vpop.f32.mrf.mxu0  ;;  %v2210_v27 = vpop.f32.mrf.mxu1  ;;  %v1133_v31 = vadd.f32 %v2882_v49, %v2853_v24 }
 0x1b6   :  { %1813 = vst.msk [vmem:[%s3272_s3 + $0xac] sm:$0xf] %vm1769_vm1, %v2092_v5  ;;  %1823 = vst.msk [vmem:[%s3272_s3 + $0xd4] sm:$0xf] %vm1769_vm1, %v2102_v9  ;;  %v1493_v0 = vmax.f32 %v1371_v62, 0.0  ;;  %v1505_v39 = vmax.f32 %v1419_v56, 0.0  ;;  %v1085_v14 = vadd.f32 %v2882_v49, %v1084_v32  ;;  %v1430_v18 = vadd.f32 %v2210_v27, %v1141_v7 }
 0x1b7   :  { %v2107_v22 = vpack.c.bf16 %v1507_v13, %v1507_v13  ;;  %v1086_v12 = vpop.f32.mrf.mxu0  ;;  %v1421_v29 = vpop.f32.mrf.mxu1 }
 0x1b8   :  { %v2093_v51 = vpack.c.bf16 %v1493_v0, %v1493_v0  ;;  %v2105_v25 = vpack.c.bf16 %v1505_v39, %v1505_v39  ;;  %v1374_v63 = vadd.f32 %v3117_v37, %v1085_v14  ;;  %v1508_v26 = vmax.f32 %v1430_v18, 0.0 }
 0x1b9   :  { %1828 = vst.msk [vmem:[%s3272_s3 + $0xe8] sm:$0xf] %vm1769_vm1, %v2107_v22  ;;  %v1422_v24 = vadd.f32 %v1421_v29, %v1133_v31  ;;  %v1089_v30 = vpop.f32.mrf.mxu0  ;;  %v2213_v11 = vpop.f32.mrf.mxu1 }
 0x1ba   :  { %1814 = vst.msk [vmem:[%s3272_s3 + $0xb0] sm:$0xf] %vm1769_vm1, %v2093_v51  ;;  %1826 = vst.msk [vmem:[%s3272_s3 + $0xe0] sm:$0xf] %vm1769_vm1, %v2105_v25  ;;  %v1494_v44 = vmax.f32 %v1374_v63, 0.0  ;;  %v2108_v36 = vpack.c.bf16 %v1508_v26, %v1508_v26  ;;  %v1090_v37 = vadd.f32 %v2882_v49, %v1089_v30  ;;  %v1443_v33 = vadd.f32 %v2213_v11, %v1154_v21 }
 0x1bb   :  { %v1506_v34 = vmax.f32 %v1422_v24, 0.0  ;;  %v1091_v46 = vpop.f32.mrf.mxu0  ;;  %v1434_v23 = vpop.f32.mrf.mxu1 }
 0x1bc   :  { %v2094_v38 = vpack.c.bf16 %v1494_v44, %v1494_v44  ;;  %1829 = vst.msk [vmem:[%s3272_s3 + $0xec] sm:$0xf] %vm1769_vm1, %v2108_v36  ;;  %v1379_v4 = vadd.f32 %v3101_v19, %v1090_v37  ;;  %v1511_v3 = vmax.f32 %v1443_v33, 0.0  ;;  %v1435_v42 = vadd.f32 %v1434_v23, %v1146_v57 }
 0x1bd   :  { %v2106_v6 = vpack.c.bf16 %v1506_v34, %v1506_v34  ;;  %v1092_v45 = vpop.f32.mrf.mxu0  ;;  %v2214_v10 = vpop.f32.mrf.mxu1 }
 0x1be   :  { %1815 = vst.msk [vmem:[%s3272_s3 + $0xb4] sm:$0xf] %vm1769_vm1, %v2094_v38  ;;  %v1495_v43 = vmax.f32 %v1379_v4, 0.0  ;;  %v2111_v50 = vpack.c.bf16 %v1511_v3, %v1511_v3  ;;  %v1509_v55 = vmax.f32 %v1435_v42, 0.0  ;;  %v1093_v19 = vadd.f32 %v2882_v49, %v1092_v45 }
 0x1bf   :  { %1827 = vst.msk [vmem:[%s3272_s3 + $0xe4] sm:$0xf] %vm1769_vm1, %v2106_v6  ;;  %v1446_v40 = vadd.f32 %v2214_v10, %v1157_v8  ;;  %v1094_v48 = vpop.f32.mrf.mxu0  ;;  %v1437_v53 = vpop.f32.mrf.mxu1 }
 0x1c0   :  { %v2095_v41 = vpack.c.bf16 %v1495_v43, %v1495_v43  ;;  %1832 = vst.msk [vmem:[%s3272_s3 + $0xf8] sm:$0xf] %vm1769_vm1, %v2111_v50  ;;  %v2109_v54 = vpack.c.bf16 %v1509_v55, %v1509_v55  ;;  %v1382_v60 = vadd.f32 %v3110_v17, %v1093_v19  ;;  %v1438_v58 = vadd.f32 %v1437_v53, %v1149_v16 }
 0x1c1   :  { %v1512_v15 = vmax.f32 %v1446_v40, 0.0 }
 0x1c2   :  { %1816 = vst.msk [vmem:[%s3272_s3 + $0xb8] sm:$0xf] %vm1769_vm1, %v2095_v41  ;;  %1830 = vst.msk [vmem:[%s3272_s3 + $0xf0] sm:$0xf] %vm1769_vm1, %v2109_v54  ;;  %v1496_v49 = vmax.f32 %v1382_v60, 0.0  ;;  %v1510_v35 = vmax.f32 %v1438_v58, 0.0 }
 0x1c3   :  { %v2112_v52 = vpack.c.bf16 %v1512_v15, %v1512_v15 }
 0x1c4   :  { %v2096_v61 = vpack.c.bf16 %v1496_v49, %v1496_v49  ;;  %v2110_v1 = vpack.c.bf16 %v1510_v35, %v1510_v35 }
 0x1c5   :  { %1833 = vst.msk [vmem:[%s3272_s3 + $0xfc] sm:$0xf] %vm1769_vm1, %v2112_v52 }
 0x1c6   :  { %1817 = vst.msk [vmem:[%s3272_s3 + $0xbc] sm:$0xf] %vm1769_vm1, %v2096_v61  ;;  %1831 = vst.msk [vmem:[%s3272_s3 + $0xf4] sm:$0xf] %vm1769_vm1, %v2110_v1 }

</bundles_post_ra>
